<compile_context>
chip_gen: v7x
topology: tpu7x:2x2x1
jax: 0.10.0
libtpu: 0.0.40
codegen_flags: <defaults>
</compile_context>

<pallas_src>
import functools

import jax
import jax.numpy as jnp
from jax import lax
from jax.experimental import pallas as pl
from jax.experimental.pallas import tpu as pltpu


def _fused_lstm_classifier_kernel(*refs, n_layers, seq_len, batch_pad, hidden,
                                  unroll):
    """Fused multi-layer LSTM + Linear + Softmax, single grid point.

    refs layout (inputs, outputs, scratch):
      x_ref (T*Bp, I),
      [w_ih_l (Iin_l, 4H), w_hh_l (H, 4H), b_l (1, 4H)] * n_layers,
      w_fc (H, O), b_fc (1, O),
      out_ref (Bp, O),
      hseq_ref (T*Bp, H) VMEM scratch, gates_ref (T*Bp, 4H) VMEM scratch.
    PyTorch gate order [i, f, g, o].
    """
    x_ref = refs[0]
    wfc_ref, bfc_ref, out_ref, hseq_ref, gates_ref = refs[1 + 3 * n_layers:]
    T, Bp, H = seq_len, batch_pad, hidden

    h = None
    for l in range(n_layers):
        wih_ref, whh_ref, b_ref = refs[1 + 3 * l: 4 + 3 * l]
        is_last = (l == n_layers - 1)

        # ---- Hoisted input projection for all timesteps at once. ----------
        # Layer 0 reads the input slab; later layers read the previous layer's
        # hidden sequence straight from VMEM scratch (no HBM round trip).
        x_in = x_ref[...] if l == 0 else hseq_ref[...]        # (T*Bp, Iin)
        gates_ref[...] = (jnp.dot(x_in, wih_ref[...],
                                  preferred_element_type=jnp.float32)
                          + b_ref[...])                        # (T*Bp, 4H)

        # Grid-/loop-invariant recurrent weight, loaded once per layer.
        w_hh = whh_ref[...]                                    # (H, 4H)

        def step(t, carry, w_hh=w_hh, write_seq=not is_last):
            h, c = carry                                       # vreg-resident
            off = pl.multiple_of(t * Bp, Bp)
            gates = (gates_ref[pl.ds(off, Bp), :]
                     + jnp.dot(h, w_hh,
                               preferred_element_type=jnp.float32))  # (Bp,4H)
            # Activate the full 4H-wide vreg once on the EUP, then slice.
            sig = jax.nn.sigmoid(gates)
            th = jnp.tanh(gates)
            i_g = sig[:, 0 * H:1 * H]
            f_g = sig[:, 1 * H:2 * H]
            g_g = th[:, 2 * H:3 * H]
            o_g = sig[:, 3 * H:4 * H]
            c_new = f_g * c + i_g * g_g
            h_new = o_g * jnp.tanh(c_new)
            if write_seq:                                      # not on the
                hseq_ref[pl.ds(off, Bp), :] = h_new            # serial chain
            return (h_new, c_new)

        h, _ = lax.fori_loop(
            0, T, step,
            (jnp.zeros((Bp, H), jnp.float32),
             jnp.zeros((Bp, H), jnp.float32)),
            unroll=unroll)

    # ---- Fused classification head on the last timestep of the last layer.
    logits = (jnp.dot(h, wfc_ref[...], preferred_element_type=jnp.float32)
              + bfc_ref[...])                                   # (Bp, O)
    m = jnp.max(logits, axis=-1, keepdims=True)
    e = jnp.exp(logits - m)
    out_ref[...] = (e / jnp.sum(e, axis=-1, keepdims=True)).astype(out_ref.dtype)


def lstm_classifier_forward(x_btI, lstm_params, w_fc, b_fc):
    """Forward pass of LSTMClassifier (eval-mode).

    x_btI: (B, T, input_dim) float32 (PyTorch batch_first layout)
    lstm_params: per layer (w_ih (4H, in), w_hh (4H, H), b_ih (4H,), b_hh (4H,))
    w_fc: (O, H), b_fc: (O,).  Returns softmax class probabilities (B, O).
    """
    B, T, I = x_btI.shape
    H = lstm_params[0][1].shape[1]
    O = w_fc.shape[0]
    L = len(lstm_params)
    Bp = max(8, ((B + 7) // 8) * 8)          # pad batch to a full sublane tile

    # (B,T,I) -> (T,Bp,I) -> (T*Bp, I): time-major, zero-padded rows, flat M.
    x = jnp.transpose(x_btI, (1, 0, 2)).astype(jnp.float32)
    x = jnp.pad(x, ((0, 0), (0, Bp - B), (0, 0))).reshape(T * Bp, I)

    flat_inputs = [x]
    in_specs = [pl.BlockSpec((T * Bp, I), lambda i: (0, 0))]
    for (w_ih, w_hh, b_ih, b_hh) in lstm_params:
        in_dim = w_ih.shape[1]
        flat_inputs += [
            jnp.transpose(w_ih).astype(jnp.float32),            # (in, 4H)
            jnp.transpose(w_hh).astype(jnp.float32),            # (H, 4H)
            (b_ih + b_hh).reshape(1, -1).astype(jnp.float32),   # (1, 4H)
        ]
        in_specs += [
            pl.BlockSpec((in_dim, 4 * H), lambda i: (0, 0)),
            pl.BlockSpec((H, 4 * H), lambda i: (0, 0)),
            pl.BlockSpec((1, 4 * H), lambda i: (0, 0)),
        ]
    flat_inputs += [jnp.transpose(w_fc).astype(jnp.float32),     # (H, O)
                    b_fc.reshape(1, O).astype(jnp.float32)]      # (1, O)
    in_specs += [pl.BlockSpec((H, O), lambda i: (0, 0)),
                 pl.BlockSpec((1, O), lambda i: (0, 0))]

    # Full unroll only at short T; partial unroll keeps vreg pressure bounded.
    unroll = True if T <= 16 else 8

    kernel = functools.partial(
        _fused_lstm_classifier_kernel,
        n_layers=L, seq_len=T, batch_pad=Bp, hidden=H, unroll=unroll)

    probs = pl.pallas_call(
        kernel,
        out_shape=jax.ShapeDtypeStruct((Bp, O), jnp.float32),
        grid_spec=pltpu.PrefetchScalarGridSpec(
            num_scalar_prefetch=0,
            grid=(1,),                                  # single grid point
            in_specs=in_specs,
            out_specs=pl.BlockSpec((Bp, O), lambda i: (0, 0)),
            scratch_shapes=[
                pltpu.VMEM((T * Bp, H), jnp.float32),       # inter-layer hseq
                pltpu.VMEM((T * Bp, 4 * H), jnp.float32),   # hoisted gates_in
            ],
        ),
        compiler_params=pltpu.CompilerParams(
            dimension_semantics=("arbitrary",)),
    )(*flat_inputs)
    return probs[:B]                                     # drop padded rows


def lstm_classifier_reference(x_btI, lstm_params, w_fc, b_fc):
    """Pure-JAX reference matching torch LSTM(+Linear+Softmax) eval semantics."""
    B, _, _ = x_btI.shape
    H = lstm_params[0][1].shape[1]
    seq = jnp.transpose(x_btI, (1, 0, 2)).astype(jnp.float32)   # (T, B, in)

    for (w_ih, w_hh, b_ih, b_hh) in lstm_params:
        bias = b_ih + b_hh

        def step(carry, x_t, w_ih=w_ih, w_hh=w_hh, bias=bias):
            h, c = carry
            gates = jnp.dot(x_t, w_ih.T) + jnp.dot(h, w_hh.T) + bias
            i_g = jax.nn.sigmoid(gates[:, 0 * H:1 * H])
            f_g = jax.nn.sigmoid(gates[:, 1 * H:2 * H])
            g_g = jnp.tanh(gates[:, 2 * H:3 * H])
            o_g = jax.nn.sigmoid(gates[:, 3 * H:4 * H])
            c_new = f_g * c + i_g * g_g
            h_new = o_g * jnp.tanh(c_new)
            return (h_new, c_new), h_new

        h0 = jnp.zeros((B, H), jnp.float32)
        c0 = jnp.zeros((B, H), jnp.float32)
        (_, _), seq = lax.scan(step, (h0, c0), seq)

    logits = jnp.dot(seq[-1], w_fc.T) + b_fc
    return jax.nn.softmax(logits, axis=1)


if __name__ == "__main__":
    # Small shapes consistent with the module:
    # batch=2, seq=8, input_dim=16, hidden_dim=32, output_dim=4, n_layers=2
    B, T, I, H, O, L = 2, 8, 16, 32, 4, 2

    key = jax.random.PRNGKey(0)
    bound = 1.0 / jnp.sqrt(H)      # PyTorch-style uniform init bound

    lstm_params = []
    for layer in range(L):
        in_dim = I if layer == 0 else H
        key, k1, k2, k3, k4 = jax.random.split(key, 5)
        w_ih = jax.random.uniform(k1, (4 * H, in_dim), minval=-bound,
                                  maxval=bound, dtype=jnp.float32)
        w_hh = jax.random.uniform(k2, (4 * H, H), minval=-bound,
                                  maxval=bound, dtype=jnp.float32)
        b_ih = jax.random.uniform(k3, (4 * H,), minval=-bound,
                                  maxval=bound, dtype=jnp.float32)
        b_hh = jax.random.uniform(k4, (4 * H,), minval=-bound,
                                  maxval=bound, dtype=jnp.float32)
        lstm_params.append((w_ih, w_hh, b_ih, b_hh))

    key, kx, k5, k6 = jax.random.split(key, 4)
    x = jax.random.normal(kx, (B, T, I), dtype=jnp.float32)
    w_fc = jax.random.uniform(k5, (O, H), minval=-bound, maxval=bound,
                              dtype=jnp.float32)
    b_fc = jax.random.uniform(k6, (O,), minval=-bound, maxval=bound,
                              dtype=jnp.float32)

    out = lstm_classifier_forward(x, lstm_params, w_fc, b_fc)
    out = jax.block_until_ready(out)

    ref = lstm_classifier_reference(x, lstm_params, w_fc, b_fc)
    assert out.shape == (B, O), out.shape
    assert jnp.allclose(out, ref, atol=1e-3, rtol=1e-3), (out, ref)
    assert jnp.allclose(jnp.sum(out, axis=1), jnp.ones((B,)), atol=1e-5)

    print("KERNEL_OK")
</pallas_src>

<mosaic_0001>
module attributes {stable_mosaic.version = 11 : i64} {
  func.func @_fused_lstm_classifier_kernel(%arg0: i32, %arg1: memref<64x16xf32, #tpu.memory_space<vmem>>, %arg2: memref<16x128xf32, #tpu.memory_space<vmem>>, %arg3: memref<32x128xf32, #tpu.memory_space<vmem>>, %arg4: memref<1x128xf32, #tpu.memory_space<vmem>>, %arg5: memref<32x128xf32, #tpu.memory_space<vmem>>, %arg6: memref<32x128xf32, #tpu.memory_space<vmem>>, %arg7: memref<1x128xf32, #tpu.memory_space<vmem>>, %arg8: memref<32x4xf32, #tpu.memory_space<vmem>>, %arg9: memref<1x4xf32, #tpu.memory_space<vmem>>, %arg10: memref<8x4xf32, #tpu.memory_space<vmem>>, %arg11: memref<64x32xf32, #tpu.memory_space<vmem>>, %arg12: memref<64x128xf32, #tpu.memory_space<vmem>>) attributes {dimension_semantics = [#tpu.dimension_semantics<arbitrary>], iteration_bounds = array<i64: 1>, scalar_prefetch = 0 : i64, scratch_operands = 2 : i64, tpu.core_type = #tpu.core_type<tc>, window_params = [{pipeline_mode = #tpu.pipeline_mode<synchronous>, transform_indices = @transform_0, window_bounds = array<i64: 64, 16>}, {pipeline_mode = #tpu.pipeline_mode<synchronous>, transform_indices = @transform_1, window_bounds = array<i64: 16, 128>}, {pipeline_mode = #tpu.pipeline_mode<synchronous>, transform_indices = @transform_2, window_bounds = array<i64: 32, 128>}, {pipeline_mode = #tpu.pipeline_mode<synchronous>, transform_indices = @transform_3, window_bounds = array<i64: 1, 128>}, {pipeline_mode = #tpu.pipeline_mode<synchronous>, transform_indices = @transform_4, window_bounds = array<i64: 32, 128>}, {pipeline_mode = #tpu.pipeline_mode<synchronous>, transform_indices = @transform_5, window_bounds = array<i64: 32, 128>}, {pipeline_mode = #tpu.pipeline_mode<synchronous>, transform_indices = @transform_6, window_bounds = array<i64: 1, 128>}, {pipeline_mode = #tpu.pipeline_mode<synchronous>, transform_indices = @transform_7, window_bounds = array<i64: 32, 4>}, {pipeline_mode = #tpu.pipeline_mode<synchronous>, transform_indices = @transform_8, window_bounds = array<i64: 1, 4>}, {pipeline_mode = #tpu.pipeline_mode<synchronous>, transform_indices = @transform_9, window_bounds = array<i64: 8, 4>}]} {
    %c0 = arith.constant 0 : index
    %c0_0 = arith.constant 0 : index
    %0 = vector.load %arg1[%c0, %c0_0] : memref<64x16xf32, #tpu.memory_space<vmem>>, vector<64x16xf32>
    %c0_1 = arith.constant 0 : index
    %c0_2 = arith.constant 0 : index
    %1 = vector.load %arg2[%c0_1, %c0_2] : memref<16x128xf32, #tpu.memory_space<vmem>>, vector<16x128xf32>
    %cst = arith.constant dense<0.000000e+00> : vector<64x128xf32>
    %2 = tpu.matmul %0, %1, %cst {dimension_numbers = #tpu.dot_dimension_numbers<[1], [0], [0], [1], [0, 0, 1, 1], [], []>} : vector<64x16xf32>, vector<16x128xf32>, vector<64x128xf32> -> vector<64x128xf32>
    %c0_3 = arith.constant 0 : index
    %c0_4 = arith.constant 0 : index
    %3 = vector.load %arg4[%c0_3, %c0_4] : memref<1x128xf32, #tpu.memory_space<vmem>>, vector<1x128xf32>
    %4 = vector.broadcast %3 : vector<1x128xf32> to vector<64x128xf32>
    %5 = arith.addf %2, %4 : vector<64x128xf32>
    %c0_5 = arith.constant 0 : index
    %c0_6 = arith.constant 0 : index
    %6 = vector.load %arg12[%c0_5, %c0_6] : memref<64x128xf32, #tpu.memory_space<vmem>>, vector<64x128xf32>
    tpu.vector_store %arg12[%c0_5, %c0_6], %5 {strides = array<i32>} : memref<64x128xf32, #tpu.memory_space<vmem>>, vector<64x128xf32>,
    %c0_7 = arith.constant 0 : index
    %c0_8 = arith.constant 0 : index
    %7 = vector.load %arg3[%c0_7, %c0_8] : memref<32x128xf32, #tpu.memory_space<vmem>>, vector<32x128xf32>
    %cst_9 = arith.constant 0.000000e+00 : f32
    %8 = vector.broadcast %cst_9 : f32 to vector<8x32xf32>
    %cst_10 = arith.constant 0.000000e+00 : f32
    %9 = vector.broadcast %cst_10 : f32 to vector<8x32xf32>
    %c0_i32 = arith.constant 0 : i32
    %c8_i32 = arith.constant 8 : i32
    %10 = arith.muli %c0_i32, %c8_i32 : i32
    %11 = tpu.assume_multiple %10, 8 : i32
    %12 = arith.index_cast %11 : i32 to index
    %c0_11 = arith.constant 0 : index
    %13 = vector.load %arg12[%12, %c0_11] : memref<64x128xf32, #tpu.memory_space<vmem>>, vector<8x128xf32>
    %cst_12 = arith.constant dense<0.000000e+00> : vector<8x128xf32>
    %14 = tpu.matmul %8, %7, %cst_12 {dimension_numbers = #tpu.dot_dimension_numbers<[1], [0], [0], [1], [0, 0, 1, 1], [], []>} : vector<8x32xf32>, vector<32x128xf32>, vector<8x128xf32> -> vector<8x128xf32>
    %15 = arith.addf %13, %14 : vector<8x128xf32>
    %16 = arith.negf %15 : vector<8x128xf32>
    %17 = math.exp %16 : vector<8x128xf32>
    %cst_13 = arith.constant 1.000000e+00 : f32
    %18 = vector.broadcast %cst_13 : f32 to vector<8x128xf32>
    %19 = arith.addf %18, %17 : vector<8x128xf32>
    %20 = arith.divf %18, %19 : vector<8x128xf32>
    %21 = math.tanh %15 : vector<8x128xf32>
    %22 = vector.extract_strided_slice %20 {offsets = [0, 0], sizes = [8, 32], strides = [1, 1]} : vector<8x128xf32> to vector<8x32xf32>
    %23 = vector.extract_strided_slice %20 {offsets = [0, 32], sizes = [8, 32], strides = [1, 1]} : vector<8x128xf32> to vector<8x32xf32>
    %24 = vector.extract_strided_slice %21 {offsets = [0, 64], sizes = [8, 32], strides = [1, 1]} : vector<8x128xf32> to vector<8x32xf32>
    %25 = vector.extract_strided_slice %20 {offsets = [0, 96], sizes = [8, 32], strides = [1, 1]} : vector<8x128xf32> to vector<8x32xf32>
    %26 = arith.mulf %23, %9 : vector<8x32xf32>
    %27 = arith.mulf %22, %24 : vector<8x32xf32>
    %28 = arith.addf %26, %27 : vector<8x32xf32>
    %29 = math.tanh %28 : vector<8x32xf32>
    %30 = arith.mulf %25, %29 : vector<8x32xf32>
    %31 = arith.index_cast %11 : i32 to index
    %c0_14 = arith.constant 0 : index
    %32 = vector.load %arg11[%31, %c0_14] : memref<64x32xf32, #tpu.memory_space<vmem>>, vector<8x32xf32>
    tpu.vector_store %arg11[%31, %c0_14], %30 {strides = array<i32>} : memref<64x32xf32, #tpu.memory_space<vmem>>, vector<8x32xf32>,
    %c1_i32 = arith.constant 1 : i32
    %c8_i32_15 = arith.constant 8 : i32
    %33 = arith.muli %c1_i32, %c8_i32_15 : i32
    %34 = tpu.assume_multiple %33, 8 : i32
    %35 = arith.index_cast %34 : i32 to index
    %c0_16 = arith.constant 0 : index
    %36 = vector.load %arg12[%35, %c0_16] : memref<64x128xf32, #tpu.memory_space<vmem>>, vector<8x128xf32>
    %cst_17 = arith.constant dense<0.000000e+00> : vector<8x128xf32>
    %37 = tpu.matmul %30, %7, %cst_17 {dimension_numbers = #tpu.dot_dimension_numbers<[1], [0], [0], [1], [0, 0, 1, 1], [], []>} : vector<8x32xf32>, vector<32x128xf32>, vector<8x128xf32> -> vector<8x128xf32>
    %38 = arith.addf %36, %37 : vector<8x128xf32>
    %39 = arith.negf %38 : vector<8x128xf32>
    %40 = math.exp %39 : vector<8x128xf32>
    %cst_18 = arith.constant 1.000000e+00 : f32
    %41 = vector.broadcast %cst_18 : f32 to vector<8x128xf32>
    %42 = arith.addf %41, %40 : vector<8x128xf32>
    %43 = arith.divf %41, %42 : vector<8x128xf32>
    %44 = math.tanh %38 : vector<8x128xf32>
    %45 = vector.extract_strided_slice %43 {offsets = [0, 0], sizes = [8, 32], strides = [1, 1]} : vector<8x128xf32> to vector<8x32xf32>
    %46 = vector.extract_strided_slice %43 {offsets = [0, 32], sizes = [8, 32], strides = [1, 1]} : vector<8x128xf32> to vector<8x32xf32>
    %47 = vector.extract_strided_slice %44 {offsets = [0, 64], sizes = [8, 32], strides = [1, 1]} : vector<8x128xf32> to vector<8x32xf32>
    %48 = vector.extract_strided_slice %43 {offsets = [0, 96], sizes = [8, 32], strides = [1, 1]} : vector<8x128xf32> to vector<8x32xf32>
    %49 = arith.mulf %46, %28 : vector<8x32xf32>
    %50 = arith.mulf %45, %47 : vector<8x32xf32>
    %51 = arith.addf %49, %50 : vector<8x32xf32>
    %52 = math.tanh %51 : vector<8x32xf32>
    %53 = arith.mulf %48, %52 : vector<8x32xf32>
    %54 = arith.index_cast %34 : i32 to index
    %c0_19 = arith.constant 0 : index
    %55 = vector.load %arg11[%54, %c0_19] : memref<64x32xf32, #tpu.memory_space<vmem>>, vector<8x32xf32>
    tpu.vector_store %arg11[%54, %c0_19], %53 {strides = array<i32>} : memref<64x32xf32, #tpu.memory_space<vmem>>, vector<8x32xf32>,
    %c2_i32 = arith.constant 2 : i32
    %c8_i32_20 = arith.constant 8 : i32
    %56 = arith.muli %c2_i32, %c8_i32_20 : i32
    %57 = tpu.assume_multiple %56, 8 : i32
    %58 = arith.index_cast %57 : i32 to index
    %c0_21 = arith.constant 0 : index
    %59 = vector.load %arg12[%58, %c0_21] : memref<64x128xf32, #tpu.memory_space<vmem>>, vector<8x128xf32>
    %cst_22 = arith.constant dense<0.000000e+00> : vector<8x128xf32>
    %60 = tpu.matmul %53, %7, %cst_22 {dimension_numbers = #tpu.dot_dimension_numbers<[1], [0], [0], [1], [0, 0, 1, 1], [], []>} : vector<8x32xf32>, vector<32x128xf32>, vector<8x128xf32> -> vector<8x128xf32>
    %61 = arith.addf %59, %60 : vector<8x128xf32>
    %62 = arith.negf %61 : vector<8x128xf32>
    %63 = math.exp %62 : vector<8x128xf32>
    %cst_23 = arith.constant 1.000000e+00 : f32
    %64 = vector.broadcast %cst_23 : f32 to vector<8x128xf32>
    %65 = arith.addf %64, %63 : vector<8x128xf32>
    %66 = arith.divf %64, %65 : vector<8x128xf32>
    %67 = math.tanh %61 : vector<8x128xf32>
    %68 = vector.extract_strided_slice %66 {offsets = [0, 0], sizes = [8, 32], strides = [1, 1]} : vector<8x128xf32> to vector<8x32xf32>
    %69 = vector.extract_strided_slice %66 {offsets = [0, 32], sizes = [8, 32], strides = [1, 1]} : vector<8x128xf32> to vector<8x32xf32>
    %70 = vector.extract_strided_slice %67 {offsets = [0, 64], sizes = [8, 32], strides = [1, 1]} : vector<8x128xf32> to vector<8x32xf32>
    %71 = vector.extract_strided_slice %66 {offsets = [0, 96], sizes = [8, 32], strides = [1, 1]} : vector<8x128xf32> to vector<8x32xf32>
    %72 = arith.mulf %69, %51 : vector<8x32xf32>
    %73 = arith.mulf %68, %70 : vector<8x32xf32>
    %74 = arith.addf %72, %73 : vector<8x32xf32>
    %75 = math.tanh %74 : vector<8x32xf32>
    %76 = arith.mulf %71, %75 : vector<8x32xf32>
    %77 = arith.index_cast %57 : i32 to index
    %c0_24 = arith.constant 0 : index
    %78 = vector.load %arg11[%77, %c0_24] : memref<64x32xf32, #tpu.memory_space<vmem>>, vector<8x32xf32>
    tpu.vector_store %arg11[%77, %c0_24], %76 {strides = array<i32>} : memref<64x32xf32, #tpu.memory_space<vmem>>, vector<8x32xf32>,
    %c3_i32 = arith.constant 3 : i32
    %c8_i32_25 = arith.constant 8 : i32
    %79 = arith.muli %c3_i32, %c8_i32_25 : i32
    %80 = tpu.assume_multiple %79, 8 : i32
    %81 = arith.index_cast %80 : i32 to index
    %c0_26 = arith.constant 0 : index
    %82 = vector.load %arg12[%81, %c0_26] : memref<64x128xf32, #tpu.memory_space<vmem>>, vector<8x128xf32>
    %cst_27 = arith.constant dense<0.000000e+00> : vector<8x128xf32>
    %83 = tpu.matmul %76, %7, %cst_27 {dimension_numbers = #tpu.dot_dimension_numbers<[1], [0], [0], [1], [0, 0, 1, 1], [], []>} : vector<8x32xf32>, vector<32x128xf32>, vector<8x128xf32> -> vector<8x128xf32>
    %84 = arith.addf %82, %83 : vector<8x128xf32>
    %85 = arith.negf %84 : vector<8x128xf32>
    %86 = math.exp %85 : vector<8x128xf32>
    %cst_28 = arith.constant 1.000000e+00 : f32
    %87 = vector.broadcast %cst_28 : f32 to vector<8x128xf32>
    %88 = arith.addf %87, %86 : vector<8x128xf32>
    %89 = arith.divf %87, %88 : vector<8x128xf32>
    %90 = math.tanh %84 : vector<8x128xf32>
    %91 = vector.extract_strided_slice %89 {offsets = [0, 0], sizes = [8, 32], strides = [1, 1]} : vector<8x128xf32> to vector<8x32xf32>
    %92 = vector.extract_strided_slice %89 {offsets = [0, 32], sizes = [8, 32], strides = [1, 1]} : vector<8x128xf32> to vector<8x32xf32>
    %93 = vector.extract_strided_slice %90 {offsets = [0, 64], sizes = [8, 32], strides = [1, 1]} : vector<8x128xf32> to vector<8x32xf32>
    %94 = vector.extract_strided_slice %89 {offsets = [0, 96], sizes = [8, 32], strides = [1, 1]} : vector<8x128xf32> to vector<8x32xf32>
    %95 = arith.mulf %92, %74 : vector<8x32xf32>
    %96 = arith.mulf %91, %93 : vector<8x32xf32>
    %97 = arith.addf %95, %96 : vector<8x32xf32>
    %98 = math.tanh %97 : vector<8x32xf32>
    %99 = arith.mulf %94, %98 : vector<8x32xf32>
    %100 = arith.index_cast %80 : i32 to index
    %c0_29 = arith.constant 0 : index
    %101 = vector.load %arg11[%100, %c0_29] : memref<64x32xf32, #tpu.memory_space<vmem>>, vector<8x32xf32>
    tpu.vector_store %arg11[%100, %c0_29], %99 {strides = array<i32>} : memref<64x32xf32, #tpu.memory_space<vmem>>, vector<8x32xf32>,
    %c4_i32 = arith.constant 4 : i32
    %c8_i32_30 = arith.constant 8 : i32
    %102 = arith.muli %c4_i32, %c8_i32_30 : i32
    %103 = tpu.assume_multiple %102, 8 : i32
    %104 = arith.index_cast %103 : i32 to index
    %c0_31 = arith.constant 0 : index
    %105 = vector.load %arg12[%104, %c0_31] : memref<64x128xf32, #tpu.memory_space<vmem>>, vector<8x128xf32>
    %cst_32 = arith.constant dense<0.000000e+00> : vector<8x128xf32>
    %106 = tpu.matmul %99, %7, %cst_32 {dimension_numbers = #tpu.dot_dimension_numbers<[1], [0], [0], [1], [0, 0, 1, 1], [], []>} : vector<8x32xf32>, vector<32x128xf32>, vector<8x128xf32> -> vector<8x128xf32>
    %107 = arith.addf %105, %106 : vector<8x128xf32>
    %108 = arith.negf %107 : vector<8x128xf32>
    %109 = math.exp %108 : vector<8x128xf32>
    %cst_33 = arith.constant 1.000000e+00 : f32
    %110 = vector.broadcast %cst_33 : f32 to vector<8x128xf32>
    %111 = arith.addf %110, %109 : vector<8x128xf32>
    %112 = arith.divf %110, %111 : vector<8x128xf32>
    %113 = math.tanh %107 : vector<8x128xf32>
    %114 = vector.extract_strided_slice %112 {offsets = [0, 0], sizes = [8, 32], strides = [1, 1]} : vector<8x128xf32> to vector<8x32xf32>
    %115 = vector.extract_strided_slice %112 {offsets = [0, 32], sizes = [8, 32], strides = [1, 1]} : vector<8x128xf32> to vector<8x32xf32>
    %116 = vector.extract_strided_slice %113 {offsets = [0, 64], sizes = [8, 32], strides = [1, 1]} : vector<8x128xf32> to vector<8x32xf32>
    %117 = vector.extract_strided_slice %112 {offsets = [0, 96], sizes = [8, 32], strides = [1, 1]} : vector<8x128xf32> to vector<8x32xf32>
    %118 = arith.mulf %115, %97 : vector<8x32xf32>
    %119 = arith.mulf %114, %116 : vector<8x32xf32>
    %120 = arith.addf %118, %119 : vector<8x32xf32>
    %121 = math.tanh %120 : vector<8x32xf32>
    %122 = arith.mulf %117, %121 : vector<8x32xf32>
    %123 = arith.index_cast %103 : i32 to index
    %c0_34 = arith.constant 0 : index
    %124 = vector.load %arg11[%123, %c0_34] : memref<64x32xf32, #tpu.memory_space<vmem>>, vector<8x32xf32>
    tpu.vector_store %arg11[%123, %c0_34], %122 {strides = array<i32>} : memref<64x32xf32, #tpu.memory_space<vmem>>, vector<8x32xf32>,
    %c5_i32 = arith.constant 5 : i32
    %c8_i32_35 = arith.constant 8 : i32
    %125 = arith.muli %c5_i32, %c8_i32_35 : i32
    %126 = tpu.assume_multiple %125, 8 : i32
    %127 = arith.index_cast %126 : i32 to index
    %c0_36 = arith.constant 0 : index
    %128 = vector.load %arg12[%127, %c0_36] : memref<64x128xf32, #tpu.memory_space<vmem>>, vector<8x128xf32>
    %cst_37 = arith.constant dense<0.000000e+00> : vector<8x128xf32>
    %129 = tpu.matmul %122, %7, %cst_37 {dimension_numbers = #tpu.dot_dimension_numbers<[1], [0], [0], [1], [0, 0, 1, 1], [], []>} : vector<8x32xf32>, vector<32x128xf32>, vector<8x128xf32> -> vector<8x128xf32>
    %130 = arith.addf %128, %129 : vector<8x128xf32>
    %131 = arith.negf %130 : vector<8x128xf32>
    %132 = math.exp %131 : vector<8x128xf32>
    %cst_38 = arith.constant 1.000000e+00 : f32
    %133 = vector.broadcast %cst_38 : f32 to vector<8x128xf32>
    %134 = arith.addf %133, %132 : vector<8x128xf32>
    %135 = arith.divf %133, %134 : vector<8x128xf32>
    %136 = math.tanh %130 : vector<8x128xf32>
    %137 = vector.extract_strided_slice %135 {offsets = [0, 0], sizes = [8, 32], strides = [1, 1]} : vector<8x128xf32> to vector<8x32xf32>
    %138 = vector.extract_strided_slice %135 {offsets = [0, 32], sizes = [8, 32], strides = [1, 1]} : vector<8x128xf32> to vector<8x32xf32>
    %139 = vector.extract_strided_slice %136 {offsets = [0, 64], sizes = [8, 32], strides = [1, 1]} : vector<8x128xf32> to vector<8x32xf32>
    %140 = vector.extract_strided_slice %135 {offsets = [0, 96], sizes = [8, 32], strides = [1, 1]} : vector<8x128xf32> to vector<8x32xf32>
    %141 = arith.mulf %138, %120 : vector<8x32xf32>
    %142 = arith.mulf %137, %139 : vector<8x32xf32>
    %143 = arith.addf %141, %142 : vector<8x32xf32>
    %144 = math.tanh %143 : vector<8x32xf32>
    %145 = arith.mulf %140, %144 : vector<8x32xf32>
    %146 = arith.index_cast %126 : i32 to index
    %c0_39 = arith.constant 0 : index
    %147 = vector.load %arg11[%146, %c0_39] : memref<64x32xf32, #tpu.memory_space<vmem>>, vector<8x32xf32>
    tpu.vector_store %arg11[%146, %c0_39], %145 {strides = array<i32>} : memref<64x32xf32, #tpu.memory_space<vmem>>, vector<8x32xf32>,
    %c6_i32 = arith.constant 6 : i32
    %c8_i32_40 = arith.constant 8 : i32
    %148 = arith.muli %c6_i32, %c8_i32_40 : i32
    %149 = tpu.assume_multiple %148, 8 : i32
    %150 = arith.index_cast %149 : i32 to index
    %c0_41 = arith.constant 0 : index
    %151 = vector.load %arg12[%150, %c0_41] : memref<64x128xf32, #tpu.memory_space<vmem>>, vector<8x128xf32>
    %cst_42 = arith.constant dense<0.000000e+00> : vector<8x128xf32>
    %152 = tpu.matmul %145, %7, %cst_42 {dimension_numbers = #tpu.dot_dimension_numbers<[1], [0], [0], [1], [0, 0, 1, 1], [], []>} : vector<8x32xf32>, vector<32x128xf32>, vector<8x128xf32> -> vector<8x128xf32>
    %153 = arith.addf %151, %152 : vector<8x128xf32>
    %154 = arith.negf %153 : vector<8x128xf32>
    %155 = math.exp %154 : vector<8x128xf32>
    %cst_43 = arith.constant 1.000000e+00 : f32
    %156 = vector.broadcast %cst_43 : f32 to vector<8x128xf32>
    %157 = arith.addf %156, %155 : vector<8x128xf32>
    %158 = arith.divf %156, %157 : vector<8x128xf32>
    %159 = math.tanh %153 : vector<8x128xf32>
    %160 = vector.extract_strided_slice %158 {offsets = [0, 0], sizes = [8, 32], strides = [1, 1]} : vector<8x128xf32> to vector<8x32xf32>
    %161 = vector.extract_strided_slice %158 {offsets = [0, 32], sizes = [8, 32], strides = [1, 1]} : vector<8x128xf32> to vector<8x32xf32>
    %162 = vector.extract_strided_slice %159 {offsets = [0, 64], sizes = [8, 32], strides = [1, 1]} : vector<8x128xf32> to vector<8x32xf32>
    %163 = vector.extract_strided_slice %158 {offsets = [0, 96], sizes = [8, 32], strides = [1, 1]} : vector<8x128xf32> to vector<8x32xf32>
    %164 = arith.mulf %161, %143 : vector<8x32xf32>
    %165 = arith.mulf %160, %162 : vector<8x32xf32>
    %166 = arith.addf %164, %165 : vector<8x32xf32>
    %167 = math.tanh %166 : vector<8x32xf32>
    %168 = arith.mulf %163, %167 : vector<8x32xf32>
    %169 = arith.index_cast %149 : i32 to index
    %c0_44 = arith.constant 0 : index
    %170 = vector.load %arg11[%169, %c0_44] : memref<64x32xf32, #tpu.memory_space<vmem>>, vector<8x32xf32>
    tpu.vector_store %arg11[%169, %c0_44], %168 {strides = array<i32>} : memref<64x32xf32, #tpu.memory_space<vmem>>, vector<8x32xf32>,
    %c7_i32 = arith.constant 7 : i32
    %c8_i32_45 = arith.constant 8 : i32
    %171 = arith.muli %c7_i32, %c8_i32_45 : i32
    %172 = tpu.assume_multiple %171, 8 : i32
    %173 = arith.index_cast %172 : i32 to index
    %c0_46 = arith.constant 0 : index
    %174 = vector.load %arg12[%173, %c0_46] : memref<64x128xf32, #tpu.memory_space<vmem>>, vector<8x128xf32>
    %cst_47 = arith.constant dense<0.000000e+00> : vector<8x128xf32>
    %175 = tpu.matmul %168, %7, %cst_47 {dimension_numbers = #tpu.dot_dimension_numbers<[1], [0], [0], [1], [0, 0, 1, 1], [], []>} : vector<8x32xf32>, vector<32x128xf32>, vector<8x128xf32> -> vector<8x128xf32>
    %176 = arith.addf %174, %175 : vector<8x128xf32>
    %177 = arith.negf %176 : vector<8x128xf32>
    %178 = math.exp %177 : vector<8x128xf32>
    %cst_48 = arith.constant 1.000000e+00 : f32
    %179 = vector.broadcast %cst_48 : f32 to vector<8x128xf32>
    %180 = arith.addf %179, %178 : vector<8x128xf32>
    %181 = arith.divf %179, %180 : vector<8x128xf32>
    %182 = math.tanh %176 : vector<8x128xf32>
    %183 = vector.extract_strided_slice %181 {offsets = [0, 0], sizes = [8, 32], strides = [1, 1]} : vector<8x128xf32> to vector<8x32xf32>
    %184 = vector.extract_strided_slice %181 {offsets = [0, 32], sizes = [8, 32], strides = [1, 1]} : vector<8x128xf32> to vector<8x32xf32>
    %185 = vector.extract_strided_slice %182 {offsets = [0, 64], sizes = [8, 32], strides = [1, 1]} : vector<8x128xf32> to vector<8x32xf32>
    %186 = vector.extract_strided_slice %181 {offsets = [0, 96], sizes = [8, 32], strides = [1, 1]} : vector<8x128xf32> to vector<8x32xf32>
    %187 = arith.mulf %184, %166 : vector<8x32xf32>
    %188 = arith.mulf %183, %185 : vector<8x32xf32>
    %189 = arith.addf %187, %188 : vector<8x32xf32>
    %190 = math.tanh %189 : vector<8x32xf32>
    %191 = arith.mulf %186, %190 : vector<8x32xf32>
    %192 = arith.index_cast %172 : i32 to index
    %c0_49 = arith.constant 0 : index
    %193 = vector.load %arg11[%192, %c0_49] : memref<64x32xf32, #tpu.memory_space<vmem>>, vector<8x32xf32>
    tpu.vector_store %arg11[%192, %c0_49], %191 {strides = array<i32>} : memref<64x32xf32, #tpu.memory_space<vmem>>, vector<8x32xf32>,
    %c8_i32_50 = arith.constant 8 : i32
    %c0_51 = arith.constant 0 : index
    %c0_52 = arith.constant 0 : index
    %194 = vector.load %arg11[%c0_51, %c0_52] : memref<64x32xf32, #tpu.memory_space<vmem>>, vector<64x32xf32>
    %c0_53 = arith.constant 0 : index
    %c0_54 = arith.constant 0 : index
    %195 = vector.load %arg5[%c0_53, %c0_54] : memref<32x128xf32, #tpu.memory_space<vmem>>, vector<32x128xf32>
    %cst_55 = arith.constant dense<0.000000e+00> : vector<64x128xf32>
    %196 = tpu.matmul %194, %195, %cst_55 {dimension_numbers = #tpu.dot_dimension_numbers<[1], [0], [0], [1], [0, 0, 1, 1], [], []>} : vector<64x32xf32>, vector<32x128xf32>, vector<64x128xf32> -> vector<64x128xf32>
    %c0_56 = arith.constant 0 : index
    %c0_57 = arith.constant 0 : index
    %197 = vector.load %arg7[%c0_56, %c0_57] : memref<1x128xf32, #tpu.memory_space<vmem>>, vector<1x128xf32>
    %198 = vector.broadcast %197 : vector<1x128xf32> to vector<64x128xf32>
    %199 = arith.addf %196, %198 : vector<64x128xf32>
    %c0_58 = arith.constant 0 : index
    %c0_59 = arith.constant 0 : index
    %200 = vector.load %arg12[%c0_58, %c0_59] : memref<64x128xf32, #tpu.memory_space<vmem>>, vector<64x128xf32>
    tpu.vector_store %arg12[%c0_58, %c0_59], %199 {strides = array<i32>} : memref<64x128xf32, #tpu.memory_space<vmem>>, vector<64x128xf32>,
    %c0_60 = arith.constant 0 : index
    %c0_61 = arith.constant 0 : index
    %201 = vector.load %arg6[%c0_60, %c0_61] : memref<32x128xf32, #tpu.memory_space<vmem>>, vector<32x128xf32>
    %cst_62 = arith.constant 0.000000e+00 : f32
    %202 = vector.broadcast %cst_62 : f32 to vector<8x32xf32>
    %cst_63 = arith.constant 0.000000e+00 : f32
    %203 = vector.broadcast %cst_63 : f32 to vector<8x32xf32>
    %c0_i32_64 = arith.constant 0 : i32
    %c8_i32_65 = arith.constant 8 : i32
    %204 = arith.muli %c0_i32_64, %c8_i32_65 : i32
    %205 = tpu.assume_multiple %204, 8 : i32
    %206 = arith.index_cast %205 : i32 to index
    %c0_66 = arith.constant 0 : index
    %207 = vector.load %arg12[%206, %c0_66] : memref<64x128xf32, #tpu.memory_space<vmem>>, vector<8x128xf32>
    %cst_67 = arith.constant dense<0.000000e+00> : vector<8x128xf32>
    %208 = tpu.matmul %202, %201, %cst_67 {dimension_numbers = #tpu.dot_dimension_numbers<[1], [0], [0], [1], [0, 0, 1, 1], [], []>} : vector<8x32xf32>, vector<32x128xf32>, vector<8x128xf32> -> vector<8x128xf32>
    %209 = arith.addf %207, %208 : vector<8x128xf32>
    %210 = arith.negf %209 : vector<8x128xf32>
    %211 = math.exp %210 : vector<8x128xf32>
    %cst_68 = arith.constant 1.000000e+00 : f32
    %212 = vector.broadcast %cst_68 : f32 to vector<8x128xf32>
    %213 = arith.addf %212, %211 : vector<8x128xf32>
    %214 = arith.divf %212, %213 : vector<8x128xf32>
    %215 = math.tanh %209 : vector<8x128xf32>
    %216 = vector.extract_strided_slice %214 {offsets = [0, 0], sizes = [8, 32], strides = [1, 1]} : vector<8x128xf32> to vector<8x32xf32>
    %217 = vector.extract_strided_slice %214 {offsets = [0, 32], sizes = [8, 32], strides = [1, 1]} : vector<8x128xf32> to vector<8x32xf32>
    %218 = vector.extract_strided_slice %215 {offsets = [0, 64], sizes = [8, 32], strides = [1, 1]} : vector<8x128xf32> to vector<8x32xf32>
    %219 = vector.extract_strided_slice %214 {offsets = [0, 96], sizes = [8, 32], strides = [1, 1]} : vector<8x128xf32> to vector<8x32xf32>
    %220 = arith.mulf %217, %203 : vector<8x32xf32>
    %221 = arith.mulf %216, %218 : vector<8x32xf32>
    %222 = arith.addf %220, %221 : vector<8x32xf32>
    %223 = math.tanh %222 : vector<8x32xf32>
    %224 = arith.mulf %219, %223 : vector<8x32xf32>
    %c1_i32_69 = arith.constant 1 : i32
    %c8_i32_70 = arith.constant 8 : i32
    %225 = arith.muli %c1_i32_69, %c8_i32_70 : i32
    %226 = tpu.assume_multiple %225, 8 : i32
    %227 = arith.index_cast %226 : i32 to index
    %c0_71 = arith.constant 0 : index
    %228 = vector.load %arg12[%227, %c0_71] : memref<64x128xf32, #tpu.memory_space<vmem>>, vector<8x128xf32>
    %cst_72 = arith.constant dense<0.000000e+00> : vector<8x128xf32>
    %229 = tpu.matmul %224, %201, %cst_72 {dimension_numbers = #tpu.dot_dimension_numbers<[1], [0], [0], [1], [0, 0, 1, 1], [], []>} : vector<8x32xf32>, vector<32x128xf32>, vector<8x128xf32> -> vector<8x128xf32>
    %230 = arith.addf %228, %229 : vector<8x128xf32>
    %231 = arith.negf %230 : vector<8x128xf32>
    %232 = math.exp %231 : vector<8x128xf32>
    %cst_73 = arith.constant 1.000000e+00 : f32
    %233 = vector.broadcast %cst_73 : f32 to vector<8x128xf32>
    %234 = arith.addf %233, %232 : vector<8x128xf32>
    %235 = arith.divf %233, %234 : vector<8x128xf32>
    %236 = math.tanh %230 : vector<8x128xf32>
    %237 = vector.extract_strided_slice %235 {offsets = [0, 0], sizes = [8, 32], strides = [1, 1]} : vector<8x128xf32> to vector<8x32xf32>
    %238 = vector.extract_strided_slice %235 {offsets = [0, 32], sizes = [8, 32], strides = [1, 1]} : vector<8x128xf32> to vector<8x32xf32>
    %239 = vector.extract_strided_slice %236 {offsets = [0, 64], sizes = [8, 32], strides = [1, 1]} : vector<8x128xf32> to vector<8x32xf32>
    %240 = vector.extract_strided_slice %235 {offsets = [0, 96], sizes = [8, 32], strides = [1, 1]} : vector<8x128xf32> to vector<8x32xf32>
    %241 = arith.mulf %238, %222 : vector<8x32xf32>
    %242 = arith.mulf %237, %239 : vector<8x32xf32>
    %243 = arith.addf %241, %242 : vector<8x32xf32>
    %244 = math.tanh %243 : vector<8x32xf32>
    %245 = arith.mulf %240, %244 : vector<8x32xf32>
    %c2_i32_74 = arith.constant 2 : i32
    %c8_i32_75 = arith.constant 8 : i32
    %246 = arith.muli %c2_i32_74, %c8_i32_75 : i32
    %247 = tpu.assume_multiple %246, 8 : i32
    %248 = arith.index_cast %247 : i32 to index
    %c0_76 = arith.constant 0 : index
    %249 = vector.load %arg12[%248, %c0_76] : memref<64x128xf32, #tpu.memory_space<vmem>>, vector<8x128xf32>
    %cst_77 = arith.constant dense<0.000000e+00> : vector<8x128xf32>
    %250 = tpu.matmul %245, %201, %cst_77 {dimension_numbers = #tpu.dot_dimension_numbers<[1], [0], [0], [1], [0, 0, 1, 1], [], []>} : vector<8x32xf32>, vector<32x128xf32>, vector<8x128xf32> -> vector<8x128xf32>
    %251 = arith.addf %249, %250 : vector<8x128xf32>
    %252 = arith.negf %251 : vector<8x128xf32>
    %253 = math.exp %252 : vector<8x128xf32>
    %cst_78 = arith.constant 1.000000e+00 : f32
    %254 = vector.broadcast %cst_78 : f32 to vector<8x128xf32>
    %255 = arith.addf %254, %253 : vector<8x128xf32>
    %256 = arith.divf %254, %255 : vector<8x128xf32>
    %257 = math.tanh %251 : vector<8x128xf32>
    %258 = vector.extract_strided_slice %256 {offsets = [0, 0], sizes = [8, 32], strides = [1, 1]} : vector<8x128xf32> to vector<8x32xf32>
    %259 = vector.extract_strided_slice %256 {offsets = [0, 32], sizes = [8, 32], strides = [1, 1]} : vector<8x128xf32> to vector<8x32xf32>
    %260 = vector.extract_strided_slice %257 {offsets = [0, 64], sizes = [8, 32], strides = [1, 1]} : vector<8x128xf32> to vector<8x32xf32>
    %261 = vector.extract_strided_slice %256 {offsets = [0, 96], sizes = [8, 32], strides = [1, 1]} : vector<8x128xf32> to vector<8x32xf32>
    %262 = arith.mulf %259, %243 : vector<8x32xf32>
    %263 = arith.mulf %258, %260 : vector<8x32xf32>
    %264 = arith.addf %262, %263 : vector<8x32xf32>
    %265 = math.tanh %264 : vector<8x32xf32>
    %266 = arith.mulf %261, %265 : vector<8x32xf32>
    %c3_i32_79 = arith.constant 3 : i32
    %c8_i32_80 = arith.constant 8 : i32
    %267 = arith.muli %c3_i32_79, %c8_i32_80 : i32
    %268 = tpu.assume_multiple %267, 8 : i32
    %269 = arith.index_cast %268 : i32 to index
    %c0_81 = arith.constant 0 : index
    %270 = vector.load %arg12[%269, %c0_81] : memref<64x128xf32, #tpu.memory_space<vmem>>, vector<8x128xf32>
    %cst_82 = arith.constant dense<0.000000e+00> : vector<8x128xf32>
    %271 = tpu.matmul %266, %201, %cst_82 {dimension_numbers = #tpu.dot_dimension_numbers<[1], [0], [0], [1], [0, 0, 1, 1], [], []>} : vector<8x32xf32>, vector<32x128xf32>, vector<8x128xf32> -> vector<8x128xf32>
    %272 = arith.addf %270, %271 : vector<8x128xf32>
    %273 = arith.negf %272 : vector<8x128xf32>
    %274 = math.exp %273 : vector<8x128xf32>
    %cst_83 = arith.constant 1.000000e+00 : f32
    %275 = vector.broadcast %cst_83 : f32 to vector<8x128xf32>
    %276 = arith.addf %275, %274 : vector<8x128xf32>
    %277 = arith.divf %275, %276 : vector<8x128xf32>
    %278 = math.tanh %272 : vector<8x128xf32>
    %279 = vector.extract_strided_slice %277 {offsets = [0, 0], sizes = [8, 32], strides = [1, 1]} : vector<8x128xf32> to vector<8x32xf32>
    %280 = vector.extract_strided_slice %277 {offsets = [0, 32], sizes = [8, 32], strides = [1, 1]} : vector<8x128xf32> to vector<8x32xf32>
    %281 = vector.extract_strided_slice %278 {offsets = [0, 64], sizes = [8, 32], strides = [1, 1]} : vector<8x128xf32> to vector<8x32xf32>
    %282 = vector.extract_strided_slice %277 {offsets = [0, 96], sizes = [8, 32], strides = [1, 1]} : vector<8x128xf32> to vector<8x32xf32>
    %283 = arith.mulf %280, %264 : vector<8x32xf32>
    %284 = arith.mulf %279, %281 : vector<8x32xf32>
    %285 = arith.addf %283, %284 : vector<8x32xf32>
    %286 = math.tanh %285 : vector<8x32xf32>
    %287 = arith.mulf %282, %286 : vector<8x32xf32>
    %c4_i32_84 = arith.constant 4 : i32
    %c8_i32_85 = arith.constant 8 : i32
    %288 = arith.muli %c4_i32_84, %c8_i32_85 : i32
    %289 = tpu.assume_multiple %288, 8 : i32
    %290 = arith.index_cast %289 : i32 to index
    %c0_86 = arith.constant 0 : index
    %291 = vector.load %arg12[%290, %c0_86] : memref<64x128xf32, #tpu.memory_space<vmem>>, vector<8x128xf32>
    %cst_87 = arith.constant dense<0.000000e+00> : vector<8x128xf32>
    %292 = tpu.matmul %287, %201, %cst_87 {dimension_numbers = #tpu.dot_dimension_numbers<[1], [0], [0], [1], [0, 0, 1, 1], [], []>} : vector<8x32xf32>, vector<32x128xf32>, vector<8x128xf32> -> vector<8x128xf32>
    %293 = arith.addf %291, %292 : vector<8x128xf32>
    %294 = arith.negf %293 : vector<8x128xf32>
    %295 = math.exp %294 : vector<8x128xf32>
    %cst_88 = arith.constant 1.000000e+00 : f32
    %296 = vector.broadcast %cst_88 : f32 to vector<8x128xf32>
    %297 = arith.addf %296, %295 : vector<8x128xf32>
    %298 = arith.divf %296, %297 : vector<8x128xf32>
    %299 = math.tanh %293 : vector<8x128xf32>
    %300 = vector.extract_strided_slice %298 {offsets = [0, 0], sizes = [8, 32], strides = [1, 1]} : vector<8x128xf32> to vector<8x32xf32>
    %301 = vector.extract_strided_slice %298 {offsets = [0, 32], sizes = [8, 32], strides = [1, 1]} : vector<8x128xf32> to vector<8x32xf32>
    %302 = vector.extract_strided_slice %299 {offsets = [0, 64], sizes = [8, 32], strides = [1, 1]} : vector<8x128xf32> to vector<8x32xf32>
    %303 = vector.extract_strided_slice %298 {offsets = [0, 96], sizes = [8, 32], strides = [1, 1]} : vector<8x128xf32> to vector<8x32xf32>
    %304 = arith.mulf %301, %285 : vector<8x32xf32>
    %305 = arith.mulf %300, %302 : vector<8x32xf32>
    %306 = arith.addf %304, %305 : vector<8x32xf32>
    %307 = math.tanh %306 : vector<8x32xf32>
    %308 = arith.mulf %303, %307 : vector<8x32xf32>
    %c5_i32_89 = arith.constant 5 : i32
    %c8_i32_90 = arith.constant 8 : i32
    %309 = arith.muli %c5_i32_89, %c8_i32_90 : i32
    %310 = tpu.assume_multiple %309, 8 : i32
    %311 = arith.index_cast %310 : i32 to index
    %c0_91 = arith.constant 0 : index
    %312 = vector.load %arg12[%311, %c0_91] : memref<64x128xf32, #tpu.memory_space<vmem>>, vector<8x128xf32>
    %cst_92 = arith.constant dense<0.000000e+00> : vector<8x128xf32>
    %313 = tpu.matmul %308, %201, %cst_92 {dimension_numbers = #tpu.dot_dimension_numbers<[1], [0], [0], [1], [0, 0, 1, 1], [], []>} : vector<8x32xf32>, vector<32x128xf32>, vector<8x128xf32> -> vector<8x128xf32>
    %314 = arith.addf %312, %313 : vector<8x128xf32>
    %315 = arith.negf %314 : vector<8x128xf32>
    %316 = math.exp %315 : vector<8x128xf32>
    %cst_93 = arith.constant 1.000000e+00 : f32
    %317 = vector.broadcast %cst_93 : f32 to vector<8x128xf32>
    %318 = arith.addf %317, %316 : vector<8x128xf32>
    %319 = arith.divf %317, %318 : vector<8x128xf32>
    %320 = math.tanh %314 : vector<8x128xf32>
    %321 = vector.extract_strided_slice %319 {offsets = [0, 0], sizes = [8, 32], strides = [1, 1]} : vector<8x128xf32> to vector<8x32xf32>
    %322 = vector.extract_strided_slice %319 {offsets = [0, 32], sizes = [8, 32], strides = [1, 1]} : vector<8x128xf32> to vector<8x32xf32>
    %323 = vector.extract_strided_slice %320 {offsets = [0, 64], sizes = [8, 32], strides = [1, 1]} : vector<8x128xf32> to vector<8x32xf32>
    %324 = vector.extract_strided_slice %319 {offsets = [0, 96], sizes = [8, 32], strides = [1, 1]} : vector<8x128xf32> to vector<8x32xf32>
    %325 = arith.mulf %322, %306 : vector<8x32xf32>
    %326 = arith.mulf %321, %323 : vector<8x32xf32>
    %327 = arith.addf %325, %326 : vector<8x32xf32>
    %328 = math.tanh %327 : vector<8x32xf32>
    %329 = arith.mulf %324, %328 : vector<8x32xf32>
    %c6_i32_94 = arith.constant 6 : i32
    %c8_i32_95 = arith.constant 8 : i32
    %330 = arith.muli %c6_i32_94, %c8_i32_95 : i32
    %331 = tpu.assume_multiple %330, 8 : i32
    %332 = arith.index_cast %331 : i32 to index
    %c0_96 = arith.constant 0 : index
    %333 = vector.load %arg12[%332, %c0_96] : memref<64x128xf32, #tpu.memory_space<vmem>>, vector<8x128xf32>
    %cst_97 = arith.constant dense<0.000000e+00> : vector<8x128xf32>
    %334 = tpu.matmul %329, %201, %cst_97 {dimension_numbers = #tpu.dot_dimension_numbers<[1], [0], [0], [1], [0, 0, 1, 1], [], []>} : vector<8x32xf32>, vector<32x128xf32>, vector<8x128xf32> -> vector<8x128xf32>
    %335 = arith.addf %333, %334 : vector<8x128xf32>
    %336 = arith.negf %335 : vector<8x128xf32>
    %337 = math.exp %336 : vector<8x128xf32>
    %cst_98 = arith.constant 1.000000e+00 : f32
    %338 = vector.broadcast %cst_98 : f32 to vector<8x128xf32>
    %339 = arith.addf %338, %337 : vector<8x128xf32>
    %340 = arith.divf %338, %339 : vector<8x128xf32>
    %341 = math.tanh %335 : vector<8x128xf32>
    %342 = vector.extract_strided_slice %340 {offsets = [0, 0], sizes = [8, 32], strides = [1, 1]} : vector<8x128xf32> to vector<8x32xf32>
    %343 = vector.extract_strided_slice %340 {offsets = [0, 32], sizes = [8, 32], strides = [1, 1]} : vector<8x128xf32> to vector<8x32xf32>
    %344 = vector.extract_strided_slice %341 {offsets = [0, 64], sizes = [8, 32], strides = [1, 1]} : vector<8x128xf32> to vector<8x32xf32>
    %345 = vector.extract_strided_slice %340 {offsets = [0, 96], sizes = [8, 32], strides = [1, 1]} : vector<8x128xf32> to vector<8x32xf32>
    %346 = arith.mulf %343, %327 : vector<8x32xf32>
    %347 = arith.mulf %342, %344 : vector<8x32xf32>
    %348 = arith.addf %346, %347 : vector<8x32xf32>
    %349 = math.tanh %348 : vector<8x32xf32>
    %350 = arith.mulf %345, %349 : vector<8x32xf32>
    %c7_i32_99 = arith.constant 7 : i32
    %c8_i32_100 = arith.constant 8 : i32
    %351 = arith.muli %c7_i32_99, %c8_i32_100 : i32
    %352 = tpu.assume_multiple %351, 8 : i32
    %353 = arith.index_cast %352 : i32 to index
    %c0_101 = arith.constant 0 : index
    %354 = vector.load %arg12[%353, %c0_101] : memref<64x128xf32, #tpu.memory_space<vmem>>, vector<8x128xf32>
    %cst_102 = arith.constant dense<0.000000e+00> : vector<8x128xf32>
    %355 = tpu.matmul %350, %201, %cst_102 {dimension_numbers = #tpu.dot_dimension_numbers<[1], [0], [0], [1], [0, 0, 1, 1], [], []>} : vector<8x32xf32>, vector<32x128xf32>, vector<8x128xf32> -> vector<8x128xf32>
    %356 = arith.addf %354, %355 : vector<8x128xf32>
    %357 = arith.negf %356 : vector<8x128xf32>
    %358 = math.exp %357 : vector<8x128xf32>
    %cst_103 = arith.constant 1.000000e+00 : f32
    %359 = vector.broadcast %cst_103 : f32 to vector<8x128xf32>
    %360 = arith.addf %359, %358 : vector<8x128xf32>
    %361 = arith.divf %359, %360 : vector<8x128xf32>
    %362 = math.tanh %356 : vector<8x128xf32>
    %363 = vector.extract_strided_slice %361 {offsets = [0, 0], sizes = [8, 32], strides = [1, 1]} : vector<8x128xf32> to vector<8x32xf32>
    %364 = vector.extract_strided_slice %361 {offsets = [0, 32], sizes = [8, 32], strides = [1, 1]} : vector<8x128xf32> to vector<8x32xf32>
    %365 = vector.extract_strided_slice %362 {offsets = [0, 64], sizes = [8, 32], strides = [1, 1]} : vector<8x128xf32> to vector<8x32xf32>
    %366 = vector.extract_strided_slice %361 {offsets = [0, 96], sizes = [8, 32], strides = [1, 1]} : vector<8x128xf32> to vector<8x32xf32>
    %367 = arith.mulf %364, %348 : vector<8x32xf32>
    %368 = arith.mulf %363, %365 : vector<8x32xf32>
    %369 = arith.addf %367, %368 : vector<8x32xf32>
    %370 = math.tanh %369 : vector<8x32xf32>
    %371 = arith.mulf %366, %370 : vector<8x32xf32>
    %c8_i32_104 = arith.constant 8 : i32
    %c0_105 = arith.constant 0 : index
    %c0_106 = arith.constant 0 : index
    %372 = vector.load %arg8[%c0_105, %c0_106] : memref<32x4xf32, #tpu.memory_space<vmem>>, vector<32x4xf32>
    %cst_107 = arith.constant dense<0.000000e+00> : vector<8x4xf32>
    %373 = tpu.matmul %371, %372, %cst_107 {dimension_numbers = #tpu.dot_dimension_numbers<[1], [0], [0], [1], [0, 0, 1, 1], [], []>} : vector<8x32xf32>, vector<32x4xf32>, vector<8x4xf32> -> vector<8x4xf32>
    %c0_108 = arith.constant 0 : index
    %c0_109 = arith.constant 0 : index
    %374 = vector.load %arg9[%c0_108, %c0_109] : memref<1x4xf32, #tpu.memory_space<vmem>>, vector<1x4xf32>
    %375 = vector.broadcast %374 : vector<1x4xf32> to vector<8x4xf32>
    %376 = arith.addf %373, %375 : vector<8x4xf32>
    %cst_110 = arith.constant dense<0xFF800000> : vector<8xf32>
    %377 = vector.multi_reduction <maximumf>, %376, %cst_110 [1] : vector<8x4xf32> to vector<8xf32>
    %378 = vector.shape_cast %377 : vector<8xf32> to vector<8x1xf32>
    %379 = vector.broadcast %378 : vector<8x1xf32> to vector<8x4xf32>
    %380 = arith.subf %376, %379 : vector<8x4xf32>
    %381 = math.exp %380 : vector<8x4xf32>
    %cst_111 = arith.constant dense<0.000000e+00> : vector<8xf32>
    %382 = vector.multi_reduction <add>, %381, %cst_111 [1] : vector<8x4xf32> to vector<8xf32>
    %383 = vector.shape_cast %382 : vector<8xf32> to vector<8x1xf32>
    %384 = vector.broadcast %383 : vector<8x1xf32> to vector<8x4xf32>
    %385 = arith.divf %381, %384 : vector<8x4xf32>
    %c0_112 = arith.constant 0 : index
    %c0_113 = arith.constant 0 : index
    %386 = vector.load %arg10[%c0_112, %c0_113] : memref<8x4xf32, #tpu.memory_space<vmem>>, vector<8x4xf32>
    tpu.vector_store %arg10[%c0_112, %c0_113], %385 {strides = array<i32>} : memref<8x4xf32, #tpu.memory_space<vmem>>, vector<8x4xf32>,
    return
  }
  func.func @transform_0(%arg0: i32) -> (i32, i32) {
    %c0_i32 = arith.constant 0 : i32
    %c0_i32_0 = arith.constant 0 : i32
    %c0_i32_1 = arith.constant 0 : i32
    return %c0_i32, %c0_i32_0 : i32, i32
  }
  func.func @transform_1(%arg0: i32) -> (i32, i32) {
    %c0_i32 = arith.constant 0 : i32
    %c0_i32_0 = arith.constant 0 : i32
    %c0_i32_1 = arith.constant 0 : i32
    return %c0_i32, %c0_i32_0 : i32, i32
  }
  func.func @transform_2(%arg0: i32) -> (i32, i32) {
    %c0_i32 = arith.constant 0 : i32
    %c0_i32_0 = arith.constant 0 : i32
    %c0_i32_1 = arith.constant 0 : i32
    return %c0_i32, %c0_i32_0 : i32, i32
  }
  func.func @transform_3(%arg0: i32) -> (i32, i32) {
    %c0_i32 = arith.constant 0 : i32
    %c0_i32_0 = arith.constant 0 : i32
    %c0_i32_1 = arith.constant 0 : i32
    return %c0_i32, %c0_i32_0 : i32, i32
  }
  func.func @transform_4(%arg0: i32) -> (i32, i32) {
    %c0_i32 = arith.constant 0 : i32
    %c0_i32_0 = arith.constant 0 : i32
    %c0_i32_1 = arith.constant 0 : i32
    return %c0_i32, %c0_i32_0 : i32, i32
  }
  func.func @transform_5(%arg0: i32) -> (i32, i32) {
    %c0_i32 = arith.constant 0 : i32
    %c0_i32_0 = arith.constant 0 : i32
    %c0_i32_1 = arith.constant 0 : i32
    return %c0_i32, %c0_i32_0 : i32, i32
  }
  func.func @transform_6(%arg0: i32) -> (i32, i32) {
    %c0_i32 = arith.constant 0 : i32
    %c0_i32_0 = arith.constant 0 : i32
    %c0_i32_1 = arith.constant 0 : i32
    return %c0_i32, %c0_i32_0 : i32, i32
  }
  func.func @transform_7(%arg0: i32) -> (i32, i32) {
    %c0_i32 = arith.constant 0 : i32
    %c0_i32_0 = arith.constant 0 : i32
    %c0_i32_1 = arith.constant 0 : i32
    return %c0_i32, %c0_i32_0 : i32, i32
  }
  func.func @transform_8(%arg0: i32) -> (i32, i32) {
    %c0_i32 = arith.constant 0 : i32
    %c0_i32_0 = arith.constant 0 : i32
    %c0_i32_1 = arith.constant 0 : i32
    return %c0_i32, %c0_i32_0 : i32, i32
  }
  func.func @transform_9(%arg0: i32) -> (i32, i32) {
    %c0_i32 = arith.constant 0 : i32
    %c0_i32_0 = arith.constant 0 : i32
    %c0_i32_1 = arith.constant 0 : i32
    return %c0_i32, %c0_i32_0 : i32, i32
  }
}

</mosaic_0001>

<bundles_post_ra>
// kernel: tpu_custom_call.1
= control target key start
LH: loop header
LB: loop body
LE: loop exit
PB: predicated region body
PF: predicated region fallthrough
CT: control target
= control target key end

     0   :  { %vm49_vm0 = vcmask 130048   ;;  %v2728_v0 = vmov 0.0|0.0   ;;  %vm2729_vm1 = vmmov 0   ;;  %v2730_v4 = vmov 0.0   ;;  %s2731_s25 = smov 64   ;;  %s3146_s1 = inlined_call_operand.vmem [shape: f32[16,128], index: 1, kind: input, shape index: {}]   ;;  %s3147_s2 = inlined_call_operand.vmem [shape: f32[32,128], index: 2, kind: input, shape index: {}]   ;;  %s3148_s0 = inlined_call_operand.vmem [shape: f32[64,16], index: 0, kind: input, shape index: {}]   ;;  %s3149_s3 = inlined_call_operand.vmem [shape: f32[1,128], index: 3, kind: input, shape index: {}]   ;;  %s3150_s4 = inlined_call_operand.vmem [shape: f32[32,128], index: 4, kind: input, shape index: {}]   ;;  %s3151_s5 = inlined_call_operand.vmem [shape: f32[32,128], index: 5, kind: input, shape index: {}]   ;;  %s3152_s6 = inlined_call_operand.vmem [shape: f32[1,128], index: 6, kind: input, shape index: {}]   ;;  %s3153_s7 = inlined_call_operand.vmem [shape: f32[32,4], index: 7, kind: input, shape index: {}]   ;;  %s3154_s8 = inlined_call_operand.vmem [shape: f32[1,4], index: 8, kind: input, shape index: {}]   ;;  %s3155_s9 = inlined_call_operand.vmem [shape: f32[8,4], index: 9, kind: output, shape index: {}]  }
   0x1   :  { %2481 = vmatprep.subr.bf16.mxu1 %v2728_v0  ;;  %v40_v1 = vld [vmem:[%s3146_s1] sm:$0xff]  ;;  %v41_v2 = vld [vmem:[%s3146_s1 + $0x8] sm:$0xff]  ;;  %2278 = vmatprep.mubr.msk.f32.mxu1 %vm2729_vm1, %v2730_v4  ;;  %v189_v9 = vld [vmem:[%s3147_s2 + $0x10] sm:$0xff]  ;;  %vm192_vm2 = vcmask 261120   ;;  %vm2080_vm3 = vcmask 31744  }
   0x2   :  { %v187_v3 = vld [vmem:[%s3147_s2] sm:$0xff]  ;;  %v2477_v5 = vpack.c.bf16 %v41_v2, %v40_v1  ;;  %v188_v6 = vld [vmem:[%s3147_s2 + $0x8] sm:$0xff]  ;;  %v190_v10 = vld [vmem:[%s3147_s2 + $0x18] sm:$0xff] }
   0x3   :  { %v32_v7 = vld [vmem:[%s3148_s0] sm:$0xff]  ;;  %v2801_v8 = vpack.c.bf16 %v188_v6, %v187_v3  ;;  %v33_v11 = vld [vmem:[%s3148_s0 + $0x8] sm:$0xff]  ;;  %v2814_v12 = vpack.c.bf16 %v190_v10, %v189_v9  ;;  %v34_v48 = vld [vmem:[%s3148_s0 + $0x10] sm:$0xff] }
   0x4   :  { %2258 = vmatprep.mubr.msk.f32.mxu0 %vm49_vm0, %v32_v7  ;;  %2478 = vmatprep.subr.bf16.mxu0 %v2477_v5  ;;  %v2835_v13 = vld [vmem:[%s3149_s3] ss:$0 sm:$0xff]  ;;  %s2732_s3 = smov 32   ;;  %v35_v49 = vld [vmem:[%s3148_s0 + $0x18] sm:$0xff]  ;;  %v37_v51 = vld [vmem:[%s3148_s0 + $0x28] sm:$0xff] }
   0x5   :  { %2483 = vmatpush3.bf16.msra.mxu1 %v2801_v8  ;;  %2480 = vmatpush3.bf16.msra.mxu0 %v2477_v5  ;;  %v36_v50 = vld [vmem:[%s3148_s0 + $0x20] sm:$0xff]  ;;  %v38_v52 = vld [vmem:[%s3148_s0 + $0x30] sm:$0xff]  ;;  %v39_v53 = vld [vmem:[%s3148_s0 + $0x38] sm:$0xff] }
   0x6   :  { %2484 = vmatprep.subr.bf16.mxu1 %v2728_v0  ;;  %2493 = vmatprep.subr.bf16.mxu0 %v2728_v0 }
   0x8   :  { %2259 = vmatmul.mubr.msk.f32.vlgmr.msra.gmra.mrb[0].mxu0 %vm49_vm0, %v33_v11 }
   0x9   :  { %2486 = vmatpush3.bf16.msra.mxu1 %v2814_v12  ;;  %2495 = vmatpush3.bf16.msra.mxu0 %v2801_v8 }
   0xa   :  { %2487 = vmatprep.subr.bf16.mxu1 %v2728_v0  ;;  %2496 = vmatprep.subr.bf16.mxu0 %v2728_v0 }
   0xb   :  { %2261 = vmatprep.mubr.msk.f32.mxu0 %vm49_vm0, %v34_v48 }
   0xc   :  { %2279 = vmatmul.mubr.f32.vlgmr.msra.gmra.mrb[0].mxu1 %v2730_v4  ;;  %2262 = vmatmul.mubr.msk.f32.gmra.mrb[2].mxu0 %vm49_vm0, %v35_v49 }
   0xd   :  { %2489 = vmatpush3.bf16.msra.mxu1 %v2801_v8  ;;  %2289 = vmatprep.mubr.msk.f32.mxu1 %vm2729_vm1, %v2730_v4 }
   0xe   :  { %2490 = vmatprep.subr.bf16.mxu1 %v2728_v0  ;;  %2498 = vmatpush3.bf16.msra.mxu0 %v2814_v12 }
   0xf   :  { %2505 = vmatprep.subr.bf16.mxu0 %v2728_v0  ;;  %2264 = vmatprep.mubr.msk.f32.mxu0 %vm49_vm0, %v36_v50 }
  0x10   :  { %2265 = vmatmul.mubr.msk.f32.gmra.mrb[4].mxu0 %vm49_vm0, %v37_v51 }
  0x11   :  { %2492 = vmatpush3.bf16.msra.mxu1 %v2814_v12  ;;  %2267 = vmatprep.mubr.msk.f32.mxu0 %vm49_vm0, %v38_v52 }
  0x12   :  { %2499 = vmatprep.subr.bf16.mxu1 %v2728_v0 }
  0x14   :  { %2268 = vmatmul.mubr.msk.f32.gmra.mrb[6].mxu0 %vm49_vm0, %v39_v53 }
  0x15   :  { %2300 = vmatprep.mubr.msk.f32.mxu0 %vm2729_vm1, %v2730_v4 }
  0xdb   :  { %v2260_v14 = vpop.f32.mrb[0].mxu0 }
  0xdc   :  { %v140_v15 = vpop.f32.mrb[1].mxu0  ;;  %v146_v34 = vadd.f32 %v2260_v14, %v2835_v13 }
  0xdd   :  { %v141_v16 = vadd.f32 %v2835_v13, %v140_v15 }
  0xdf   :  { %v262_v17 = vpop.f32.mrb[0].mxu1  ;;  %v2263_v57 = vpop.f32.mrb[2].mxu0 }
  0xe0   :  { %v266_v18 = vadd.f32 %v262_v17, %v141_v16  ;;  %v2280_v19 = vpop.f32.mrb[1].mxu1  ;;  %v150_v58 = vpop.f32.mrb[3].mxu0 }
  0xe1   :  { %v151_v1 = vadd.f32 %v2835_v13, %v150_v58 }
  0xe2   :  { %2596 = vtanh.f32 %v266_v18  ;;  %v2106_v21 = vmul.f32 -1.442695, %v266_v18 }
  0xe3   :  { %v2881_v59 = vpop.f32.mrb[4].mxu0 }
  0xe4   :  { %2598 = vpow2.f32 %v2106_v21  ;;  %v2883_v60 = vpop.f32.mrb[5].mxu0 }
  0xe7   :  { %v2885_v61 = vpop.f32.mrb[6].mxu0 }
  0xe8   :  { %v2887_v62 = vpop.f32.mrb[7].mxu0 }
  0xec   :  { %v2597_v20 = vpop.eup %2596 }
  0xed   :  { %276 = vrot.lane.b32.xlu0 %v2597_v20, %s2731_s25 }
  0xee   :  { %v2599_v22 = vpop.eup %2598 }
  0xef   :  { %v270_v23 = vadd.f32 1.0, %v2599_v22 }
  0xf1   :  { %2600 = vrcp.f32 %v270_v23  ;;  %v156_v23 = vadd.f32 %v2263_v57, %v2835_v13 }
  0xfb   :  { %v2601_v24 = vpop.eup %2600 }
  0xfc   :  { %v274_v27 = vmul.f32 0.0, %v2601_v24 }
 0x15f   :  { %v277_v25 = vpop.permute.xlu0 %276 }
 0x160   :  { %v279_v26 = vmul.f32 %v2601_v24, %v277_v25 }
 0x162   :  { %281 = vrot.lane.b32.xlu0 %v279_v26, %s2732_s3 }
 0x1d4   :  { %v282_v28 = vpop.permute.xlu0 %281 }
 0x1d5   :  { %v284_v29 = vadd.f32 %v282_v28, %v274_v27 }
 0x1d7   :  { %2602 = vtanh.f32 %v284_v29 }
 0x1e1   :  { %v2603_v30 = vpop.eup %2602 }
 0x1e2   :  { %287 = vrot.lane.b32.xlu1 %v2603_v30, %s2731_s25 }
 0x254   :  { %v288_v31 = vpop.permute.xlu1 %287 }
 0x255   :  { %v290_v32 = vmul.f32 %v2601_v24, %v288_v31 }
 0x257   :  { %292 = vrot.lane.b32.xlu1 %v290_v32, %s2732_s3 }
 0x2c9   :  { %v293_v33 = vpop.permute.xlu1 %292 }
 0x2ca   :  { %295 = vst.msk [vmem:[#allocation2] sm:$0xff] %vm192_vm2, %v293_v33  ;;  %2290 = vmatmul.mubr.msk.f32.vlgmr.msra.gmra.mrb[2].mxu1 %vm192_vm2, %v293_v33 }
 0x2cb   :  { %2501 = vmatpush3.bf16.msra.mxu1 %v2801_v8  ;;  %2311 = vmatprep.mubr.msk.f32.mxu1 %vm2729_vm1, %v2730_v4 }
 0x2cc   :  { %2502 = vmatprep.subr.bf16.mxu1 %v2728_v0 }
 0x2cf   :  { %2504 = vmatpush3.bf16.msra.mxu1 %v2814_v12 }
 0x2d0   :  { %2511 = vmatprep.subr.bf16.mxu1 %v2728_v0 }
 0x39d   :  { %v366_v35 = vpop.f32.mrb[2].mxu1 }
 0x39e   :  { %v370_v36 = vadd.f32 %v366_v35, %v146_v34  ;;  %v2291_v37 = vpop.f32.mrb[3].mxu1 }
 0x3a0   :  { %2604 = vtanh.f32 %v370_v36  ;;  %v2108_v39 = vmul.f32 -1.442695, %v370_v36 }
 0x3a2   :  { %2606 = vpow2.f32 %v2108_v39 }
 0x3aa   :  { %v2605_v38 = vpop.eup %2604 }
 0x3ab   :  { %380 = vrot.lane.b32.xlu0 %v2605_v38, %s2731_s25 }
 0x3ac   :  { %v2607_v40 = vpop.eup %2606 }
 0x3ad   :  { %v374_v41 = vadd.f32 1.0, %v2607_v40 }
 0x3af   :  { %2608 = vrcp.f32 %v374_v41  ;;  %v161_v41 = vadd.f32 %v2835_v13, %v2883_v60  ;;  %v166_v60 = vadd.f32 %v2881_v59, %v2835_v13 }
 0x3b9   :  { %v2609_v42 = vpop.eup %2608 }
 0x3ba   :  { %v378_v45 = vmul.f32 %v2609_v42, %v284_v29 }
 0x41d   :  { %v381_v43 = vpop.permute.xlu0 %380 }
 0x41e   :  { %v383_v44 = vmul.f32 %v2609_v42, %v381_v43 }
 0x420   :  { %385 = vrot.lane.b32.xlu1 %v383_v44, %s2732_s3 }
 0x492   :  { %v386_v46 = vpop.permute.xlu1 %385 }
 0x493   :  { %v388_v47 = vadd.f32 %v386_v46, %v378_v45 }
 0x495   :  { %2610 = vtanh.f32 %v388_v47 }
 0x49f   :  { %v2611_v54 = vpop.eup %2610 }
 0x4a0   :  { %391 = vrot.lane.b32.xlu0 %v2611_v54, %s2731_s25 }
 0x512   :  { %v392_v55 = vpop.permute.xlu0 %391 }
 0x513   :  { %v394_v56 = vmul.f32 %v2609_v42, %v392_v55 }
 0x515   :  { %396 = vrot.lane.b32.xlu1 %v394_v56, %s2732_s3 }
 0x587   :  { %v397_v63 = vpop.permute.xlu1 %396 }
 0x588   :  { %400 = vst.msk [vmem:[#allocation2 + $0x8] sm:$0xff] %vm192_vm2, %v397_v63  ;;  %2301 = vmatmul.mubr.msk.f32.vlgmr.msra.gmra.mrb[8].mxu0 %vm192_vm2, %v397_v63 }
 0x589   :  { %2507 = vmatpush3.bf16.msra.mxu0 %v2801_v8  ;;  %2322 = vmatprep.mubr.msk.f32.mxu0 %vm2729_vm1, %v2730_v4 }
 0x58a   :  { %2508 = vmatprep.subr.bf16.mxu0 %v2728_v0 }
 0x58d   :  { %2510 = vmatpush3.bf16.msra.mxu0 %v2814_v12 }
 0x58e   :  { %2517 = vmatprep.subr.bf16.mxu0 %v2728_v0 }
 0x65b   :  { %v471_v2 = vpop.f32.mrb[8].mxu0 }
 0x65c   :  { %v475_v3 = vadd.f32 %v471_v2, %v151_v1  ;;  %v2302_v5 = vpop.f32.mrb[9].mxu0 }
 0x65e   :  { %2612 = vtanh.f32 %v475_v3  ;;  %v2110_v7 = vmul.f32 -1.442695, %v475_v3 }
 0x660   :  { %2614 = vpow2.f32 %v2110_v7 }
 0x668   :  { %v2613_v6 = vpop.eup %2612 }
 0x669   :  { %485 = vrot.lane.b32.xlu0 %v2613_v6, %s2731_s25 }
 0x66a   :  { %v2615_v9 = vpop.eup %2614 }
 0x66b   :  { %v479_v10 = vadd.f32 1.0, %v2615_v9 }
 0x66d   :  { %2616 = vrcp.f32 %v479_v10 }
 0x677   :  { %v2617_v11 = vpop.eup %2616 }
 0x678   :  { %v483_v16 = vmul.f32 %v2617_v11, %v388_v47 }
 0x6db   :  { %v486_v14 = vpop.permute.xlu0 %485 }
 0x6dc   :  { %v488_v15 = vmul.f32 %v2617_v11, %v486_v14  ;;  %v1039_v14 = vld [vmem:[%s3150_s4] sm:$0xff] }
 0x6de   :  { %490 = vrot.lane.b32.xlu1 %v488_v15, %s2732_s3  ;;  %v1040_v15 = vld [vmem:[%s3150_s4 + $0x8] sm:$0xff] }
 0x750   :  { %v491_v17 = vpop.permute.xlu1 %490 }
 0x751   :  { %v493_v18 = vadd.f32 %v491_v17, %v483_v16  ;;  %v2529_v16 = vpack.c.bf16 %v1040_v15, %v1039_v14 }
 0x753   :  { %2618 = vtanh.f32 %v493_v18 }
 0x75d   :  { %v2619_v19 = vpop.eup %2618 }
 0x75e   :  { %496 = vrot.lane.b32.xlu0 %v2619_v19, %s2731_s25 }
 0x7d0   :  { %v497_v20 = vpop.permute.xlu0 %496 }
 0x7d1   :  { %v499_v21 = vmul.f32 %v2617_v11, %v497_v20  ;;  %v1041_v20 = vld [vmem:[%s3150_s4 + $0x10] sm:$0xff] }
 0x7d3   :  { %501 = vrot.lane.b32.xlu1 %v499_v21, %s2732_s3  ;;  %v1042_v21 = vld [vmem:[%s3150_s4 + $0x18] sm:$0xff] }
 0x845   :  { %v502_v22 = vpop.permute.xlu1 %501 }
 0x846   :  { %505 = vst.msk [vmem:[#allocation2 + $0x10] sm:$0xff] %vm192_vm2, %v502_v22  ;;  %2312 = vmatmul.mubr.msk.f32.vlgmr.msra.gmra.mrb[4].mxu1 %vm192_vm2, %v502_v22  ;;  %v2533_v22 = vpack.c.bf16 %v1042_v21, %v1041_v20 }
 0x847   :  { %2513 = vmatpush3.bf16.msra.mxu1 %v2801_v8  ;;  %2333 = vmatprep.mubr.msk.f32.mxu1 %vm2729_vm1, %v2730_v4 }
 0x848   :  { %2514 = vmatprep.subr.bf16.mxu1 %v2728_v0 }
 0x84b   :  { %2516 = vmatpush3.bf16.msra.mxu1 %v2814_v12 }
 0x84c   :  { %2523 = vmatprep.subr.bf16.mxu1 %v2728_v0 }
 0x919   :  { %v576_v24 = vpop.f32.mrb[4].mxu1 }
 0x91a   :  { %v580_v25 = vadd.f32 %v576_v24, %v156_v23  ;;  %v2313_v26 = vpop.f32.mrb[5].mxu1  ;;  %v1031_v24 = vld [vmem:[#allocation2] sm:$0xff] }
 0x91b   :  { %v1033_v26 = vld [vmem:[#allocation2 + $0x10] sm:$0xff] }
 0x91c   :  { %2620 = vtanh.f32 %v580_v25  ;;  %v2112_v28 = vmul.f32 -1.442695, %v580_v25  ;;  %v1032_v25 = vld [vmem:[#allocation2 + $0x8] sm:$0xff] }
 0x91e   :  { %2622 = vpow2.f32 %v2112_v28 }
 0x926   :  { %v2621_v27 = vpop.eup %2620 }
 0x927   :  { %590 = vrot.lane.b32.xlu0 %v2621_v27, %s2731_s25 }
 0x928   :  { %v2623_v29 = vpop.eup %2622 }
 0x929   :  { %v584_v30 = vadd.f32 1.0, %v2623_v29 }
 0x92b   :  { %2624 = vrcp.f32 %v584_v30  ;;  %v171_v30 = vadd.f32 %v2835_v13, %v2887_v62 }
 0x935   :  { %v2625_v31 = vpop.eup %2624 }
 0x936   :  { %v588_v34 = vmul.f32 %v2625_v31, %v493_v18 }
 0x999   :  { %v591_v32 = vpop.permute.xlu0 %590 }
 0x99a   :  { %v593_v33 = vmul.f32 %v2625_v31, %v591_v32 }
 0x99c   :  { %595 = vrot.lane.b32.xlu1 %v593_v33, %s2732_s3 }
 0xa0e   :  { %v596_v35 = vpop.permute.xlu1 %595 }
 0xa0f   :  { %v598_v36 = vadd.f32 %v596_v35, %v588_v34 }
 0xa11   :  { %2626 = vtanh.f32 %v598_v36 }
 0xa1b   :  { %v2627_v37 = vpop.eup %2626 }
 0xa1c   :  { %601 = vrot.lane.b32.xlu0 %v2627_v37, %s2731_s25 }
 0xa8e   :  { %v602_v38 = vpop.permute.xlu0 %601 }
 0xa8f   :  { %v604_v39 = vmul.f32 %v2625_v31, %v602_v38 }
 0xa91   :  { %606 = vrot.lane.b32.xlu1 %v604_v39, %s2732_s3 }
 0xb03   :  { %v607_v40 = vpop.permute.xlu1 %606 }
 0xb04   :  { %610 = vst.msk [vmem:[#allocation2 + $0x18] sm:$0xff] %vm192_vm2, %v607_v40  ;;  %2323 = vmatmul.mubr.msk.f32.vlgmr.msra.gmra.mrb[10].mxu0 %vm192_vm2, %v607_v40 }
 0xb05   :  { %2519 = vmatpush3.bf16.msra.mxu0 %v2801_v8  ;;  %2344 = vmatprep.mubr.msk.f32.mxu0 %vm2729_vm1, %v2730_v4 }
 0xb06   :  { %2520 = vmatprep.subr.bf16.mxu0 %v2728_v0 }
 0xb09   :  { %2522 = vmatpush3.bf16.msra.mxu0 %v2814_v12 }
 0xb0a   :  { %2530 = vmatprep.subr.bf16.mxu0 %v2529_v16 }
 0xb0b   :  { %v1034_v27 = vld [vmem:[#allocation2 + $0x18] sm:$0xff] }
 0xbd7   :  { %v681_v42 = vpop.f32.mrb[10].mxu0 }
 0xbd8   :  { %v685_v43 = vadd.f32 %v681_v42, %v161_v41  ;;  %v2324_v44 = vpop.f32.mrb[11].mxu0 }
 0xbda   :  { %2628 = vtanh.f32 %v685_v43  ;;  %v2114_v46 = vmul.f32 -1.442695, %v685_v43 }
 0xbdc   :  { %2630 = vpow2.f32 %v2114_v46 }
 0xbe4   :  { %v2629_v45 = vpop.eup %2628 }
 0xbe5   :  { %695 = vrot.lane.b32.xlu0 %v2629_v45, %s2731_s25 }
 0xbe6   :  { %v2631_v47 = vpop.eup %2630 }
 0xbe7   :  { %v689_v48 = vadd.f32 1.0, %v2631_v47 }
 0xbe9   :  { %2632 = vrcp.f32 %v689_v48 }
 0xbf3   :  { %v2633_v49 = vpop.eup %2632 }
 0xbf4   :  { %v693_v52 = vmul.f32 %v2633_v49, %v598_v36 }
 0xc57   :  { %v696_v50 = vpop.permute.xlu0 %695 }
 0xc58   :  { %v698_v51 = vmul.f32 %v2633_v49, %v696_v50  ;;  %v1187_v50 = vld [vmem:[%s3151_s5] sm:$0xff] }
 0xc5a   :  { %700 = vrot.lane.b32.xlu1 %v698_v51, %s2732_s3  ;;  %v1188_v51 = vld [vmem:[%s3151_s5 + $0x8] sm:$0xff] }
 0xccc   :  { %v701_v53 = vpop.permute.xlu1 %700 }
 0xccd   :  { %v703_v54 = vadd.f32 %v701_v53, %v693_v52  ;;  %v2987_v52 = vpack.c.bf16 %v1188_v51, %v1187_v50  ;;  %v1189_v53 = vld [vmem:[%s3151_s5 + $0x10] sm:$0xff] }
 0xccf   :  { %2634 = vtanh.f32 %v703_v54 }
 0xcd9   :  { %v2635_v55 = vpop.eup %2634 }
 0xcda   :  { %706 = vrot.lane.b32.xlu0 %v2635_v55, %s2731_s25 }
 0xd4c   :  { %v707_v56 = vpop.permute.xlu0 %706 }
 0xd4d   :  { %v709_v57 = vmul.f32 %v2633_v49, %v707_v56 }
 0xd4f   :  { %711 = vrot.lane.b32.xlu1 %v709_v57, %s2732_s3 }
 0xdc1   :  { %v712_v58 = vpop.permute.xlu1 %711 }
 0xdc2   :  { %715 = vst.msk [vmem:[#allocation2 + $0x20] sm:$0xff] %vm192_vm2, %v712_v58  ;;  %2334 = vmatmul.mubr.msk.f32.vlgmr.msra.gmra.mrb[6].mxu1 %vm192_vm2, %v712_v58 }
 0xdc3   :  { %2525 = vmatpush3.bf16.msra.mxu1 %v2801_v8  ;;  %2355 = vmatprep.mubr.msk.f32.mxu1 %vm2729_vm1, %v2730_v4 }
 0xdc4   :  { %2526 = vmatprep.subr.bf16.mxu1 %v2728_v0 }
 0xdc7   :  { %2528 = vmatpush3.bf16.msra.mxu1 %v2814_v12 }
 0xdc8   :  { %2537 = vmatprep.subr.bf16.mxu1 %v2728_v0 }
 0xdc9   :  { %v1035_v28 = vld [vmem:[#allocation2 + $0x20] sm:$0xff] }
 0xe95   :  { %v786_v63 = vpop.f32.mrb[6].mxu1 }
 0xe96   :  { %v790_v1 = vadd.f32 %v786_v63, %v166_v60  ;;  %v2335_v2 = vpop.f32.mrb[7].mxu1  ;;  %v176_v63 = vadd.f32 %v2885_v61, %v2835_v13 }
 0xe98   :  { %2636 = vtanh.f32 %v790_v1  ;;  %v2116_v8 = vmul.f32 -1.442695, %v790_v1 }
 0xe9a   :  { %2638 = vpow2.f32 %v2116_v8  ;;  %v3023_v8 = vld [vmem:[%s3152_s6] ss:$0 sm:$0xff] }
 0xea2   :  { %v2637_v3 = vpop.eup %2636 }
 0xea3   :  { %800 = vrot.lane.b32.xlu0 %v2637_v3, %s2731_s25 }
 0xea4   :  { %v2639_v5 = vpop.eup %2638 }
 0xea5   :  { %v794_v6 = vadd.f32 1.0, %v2639_v5 }
 0xea7   :  { %2640 = vrcp.f32 %v794_v6 }
 0xeb1   :  { %v2641_v7 = vpop.eup %2640 }
 0xeb2   :  { %v798_v10 = vmul.f32 %v2641_v7, %v703_v54  ;;  %v1190_v54 = vld [vmem:[%s3151_s5 + $0x18] sm:$0xff] }
 0xeb3   :  { %v2997_v55 = vpack.c.bf16 %v1190_v54, %v1189_v53 }
 0xf15   :  { %v801_v9 = vpop.permute.xlu0 %800 }
 0xf16   :  { %v803_v12 = vmul.f32 %v2641_v7, %v801_v9 }
 0xf18   :  { %805 = vrot.lane.b32.xlu1 %v803_v12, %s2732_s3 }
 0xf8a   :  { %v806_v11 = vpop.permute.xlu1 %805 }
 0xf8b   :  { %v808_v59 = vadd.f32 %v806_v11, %v798_v10 }
 0xf8d   :  { %2642 = vtanh.f32 %v808_v59 }
 0xf97   :  { %v2643_v17 = vpop.eup %2642 }
 0xf98   :  { %811 = vrot.lane.b32.xlu0 %v2643_v17, %s2731_s25 }
0x100a   :  { %v812_v18 = vpop.permute.xlu0 %811 }
0x100b   :  { %v814_v19 = vmul.f32 %v2641_v7, %v812_v18 }
0x100d   :  { %816 = vrot.lane.b32.xlu1 %v814_v19, %s2732_s3 }
0x107f   :  { %v817_v23 = vpop.permute.xlu1 %816 }
0x1080   :  { %820 = vst.msk [vmem:[#allocation2 + $0x28] sm:$0xff] %vm192_vm2, %v817_v23  ;;  %2345 = vmatmul.mubr.msk.f32.vlgmr.msra.gmra.mrb[12].mxu0 %vm192_vm2, %v817_v23 }
0x1081   :  { %2532 = vmatpush3.bf16.msra.mxu0 %v2529_v16  ;;  %2366 = vmatprep.mubr.msk.f32.mxu0 %vm192_vm2, %v1031_v24 }
0x1082   :  { %2534 = vmatprep.subr.bf16.mxu0 %v2533_v22 }
0x1085   :  { %2536 = vmatpush3.bf16.msra.mxu0 %v2533_v22 }
0x1086   :  { %2549 = vmatprep.subr.bf16.mxu0 %v2728_v0 }
0x1087   :  { %v1036_v29 = vld [vmem:[#allocation2 + $0x28] sm:$0xff] }
0x1088   :  { %2367 = vmatmul.mubr.msk.f32.vlgmr.msra.gmra.mrb[14].mxu0 %vm192_vm2, %v1032_v25 }
0x1089   :  { %2369 = vmatprep.mubr.msk.f32.mxu0 %vm192_vm2, %v1033_v26  ;;  %2551 = vmatpush3.bf16.msra.mxu0 %v2987_v52 }
0x108a   :  { %2552 = vmatprep.subr.bf16.mxu0 %v2728_v0 }
0x108c   :  { %2370 = vmatmul.mubr.msk.f32.gmra.mrb[16].mxu0 %vm192_vm2, %v1034_v27 }
0x108d   :  { %2372 = vmatprep.mubr.msk.f32.mxu0 %vm192_vm2, %v1035_v28  ;;  %2554 = vmatpush3.bf16.msra.mxu0 %v2997_v55 }
0x108e   :  { %2561 = vmatprep.subr.bf16.mxu0 %v2728_v0 }
0x1090   :  { %2373 = vmatmul.mubr.msk.f32.gmra.mrb[18].mxu0 %vm192_vm2, %v1036_v29 }
0x1153   :  { %v891_v31 = vpop.f32.mrb[12].mxu0 }
0x1154   :  { %v895_v32 = vadd.f32 %v891_v31, %v171_v30  ;;  %v2346_v33 = vpop.f32.mrb[13].mxu0 }
0x1156   :  { %2644 = vtanh.f32 %v895_v32  ;;  %v2118_v41 = vmul.f32 -1.442695, %v895_v32 }
0x1158   :  { %2646 = vpow2.f32 %v2118_v41 }
0x115b   :  { %v2965_v34 = vpop.f32.mrb[14].mxu0 }
0x115c   :  { %v1140_v35 = vpop.f32.mrb[15].mxu0 }
0x115d   :  { %v1141_v5 = vadd.f32 %v3023_v8, %v1140_v35 }
0x115f   :  { %v2967_v36 = vpop.f32.mrb[16].mxu0 }
0x1160   :  { %v2645_v37 = vpop.eup %2644  ;;  %v2969_v38 = vpop.f32.mrb[17].mxu0 }
0x1161   :  { %905 = vrot.lane.b32.xlu0 %v2645_v37, %s2731_s25  ;;  %v1146_v37 = vadd.f32 %v2965_v34, %v3023_v8 }
0x1162   :  { %v2647_v62 = vpop.eup %2646 }
0x1163   :  { %v2972_v39 = vpop.f32.mrb[18].mxu0  ;;  %v899_v42 = vadd.f32 1.0, %v2647_v62 }
0x1164   :  { %v2974_v40 = vpop.f32.mrb[19].mxu0 }
0x1165   :  { %2648 = vrcp.f32 %v899_v42 }
0x116f   :  { %v2649_v43 = vpop.eup %2648 }
0x1170   :  { %v903_v46 = vmul.f32 %v2649_v43, %v808_v59 }
0x11d3   :  { %v906_v44 = vpop.permute.xlu0 %905 }
0x11d4   :  { %v908_v45 = vmul.f32 %v2649_v43, %v906_v44 }
0x11d6   :  { %910 = vrot.lane.b32.xlu1 %v908_v45, %s2732_s3 }
0x1248   :  { %v911_v47 = vpop.permute.xlu1 %910 }
0x1249   :  { %v2977_v48 = vadd.f32 %v911_v47, %v903_v46 }
0x124b   :  { %2650 = vtanh.f32 %v2977_v48 }
0x1255   :  { %v2651_v49 = vpop.eup %2650 }
0x1256   :  { %916 = vrot.lane.b32.xlu0 %v2651_v49, %s2731_s25 }
0x12c8   :  { %v917_v56 = vpop.permute.xlu0 %916 }
0x12c9   :  { %v919_v57 = vmul.f32 %v2649_v43, %v917_v56 }
0x12cb   :  { %921 = vrot.lane.b32.xlu1 %v919_v57, %s2732_s3 }
0x133d   :  { %v922_v58 = vpop.permute.xlu1 %921 }
0x133e   :  { %925 = vst.msk [vmem:[#allocation2 + $0x30] sm:$0xff] %vm192_vm2, %v922_v58  ;;  %2356 = vmatmul.mubr.msk.f32.vlgmr.msra.gmra.mrb[8].mxu1 %vm192_vm2, %v922_v58 }
0x133f   :  { %2539 = vmatpush3.bf16.msra.mxu1 %v2987_v52  ;;  %2386 = vmatprep.mubr.msk.f32.mxu1 %vm2729_vm1, %v2730_v4 }
0x1340   :  { %2540 = vmatprep.subr.bf16.mxu1 %v2728_v0 }
0x1343   :  { %2542 = vmatpush3.bf16.msra.mxu1 %v2997_v55 }
0x1344   :  { %2543 = vmatprep.subr.bf16.mxu1 %v2728_v0 }
0x1345   :  { %v1037_v60 = vld [vmem:[#allocation2 + $0x30] sm:$0xff] }
0x1346   :  { %2387 = vmatmul.mubr.f32.vlgmr.msra.gmra.mrb[10].mxu1 %v2730_v4  ;;  %2375 = vmatprep.mubr.msk.f32.mxu0 %vm192_vm2, %v1037_v60 }
0x1347   :  { %2545 = vmatpush3.bf16.msra.mxu1 %v2987_v52  ;;  %2397 = vmatprep.mubr.msk.f32.mxu1 %vm2729_vm1, %v2730_v4 }
0x1348   :  { %2546 = vmatprep.subr.bf16.mxu1 %v2728_v0 }
0x134b   :  { %2548 = vmatpush3.bf16.msra.mxu1 %v2997_v55 }
0x134c   :  { %2555 = vmatprep.subr.bf16.mxu1 %v2728_v0 }
0x1411   :  { %v996_v1 = vpop.f32.mrb[8].mxu1 }
0x1412   :  { %v1000_v2 = vadd.f32 %v996_v1, %v176_v63  ;;  %v2357_v3 = vpop.f32.mrb[9].mxu1 }
0x1414   :  { %v2120_v20 = vmul.f32 -1.442695, %v1000_v2 }
0x1419   :  { %v1258_v6 = vpop.f32.mrb[10].mxu1 }
0x141a   :  { %v1262_v7 = vadd.f32 %v1258_v6, %v1141_v5  ;;  %v2388_v9 = vpop.f32.mrb[11].mxu1 }
0x141c   :  { %2652 = vtanh.f32 %v1262_v7  ;;  %v2130_v10 = vmul.f32 -1.442695, %v1262_v7 }
0x141e   :  { %2654 = vpow2.f32 %v2130_v10 }
0x1426   :  { %v2653_v12 = vpop.eup %2652 }
0x1427   :  { %1272 = vrot.lane.b32.xlu0 %v2653_v12, %s2731_s25 }
0x1428   :  { %v2655_v13 = vpop.eup %2654 }
0x1429   :  { %v1266_v61 = vadd.f32 1.0, %v2655_v13 }
0x142b   :  { %2656 = vrcp.f32 %v1266_v61 }
0x1435   :  { %v2657_v11 = vpop.eup %2656 }
0x1436   :  { %v1270_v15 = vmul.f32 0.0, %v2657_v11 }
0x1499   :  { %v1273_v59 = vpop.permute.xlu0 %1272 }
0x149a   :  { %v1275_v14 = vmul.f32 %v2657_v11, %v1273_v59 }
0x149c   :  { %1277 = vrot.lane.b32.xlu1 %v1275_v14, %s2732_s3 }
0x150e   :  { %v1278_v16 = vpop.permute.xlu1 %1277 }
0x150f   :  { %v1280_v17 = vadd.f32 %v1278_v16, %v1270_v15 }
0x1511   :  { %2658 = vtanh.f32 %v1280_v17 }
0x1512   :  { %2660 = vtanh.f32 %v1000_v2  ;;  %v1151_v2 = vadd.f32 %v3023_v8, %v2969_v38 }
0x1513   :  { %2662 = vpow2.f32 %v2120_v20 }
0x151b   :  { %v2659_v18 = vpop.eup %2658 }
0x151c   :  { %1283 = vrot.lane.b32.xlu0 %v2659_v18, %s2731_s25  ;;  %v2661_v19 = vpop.eup %2660 }
0x151d   :  { %v2663_v21 = vpop.eup %2662 }
0x151e   :  { %v1004_v22 = vadd.f32 1.0, %v2663_v21 }
0x1520   :  { %1010 = vrot.lane.b32.xlu0 %v2661_v19, %s2731_s25  ;;  %2664 = vrcp.f32 %v1004_v22  ;;  %v1156_v19 = vadd.f32 %v2967_v36, %v3023_v8 }
0x152a   :  { %v2665_v25 = vpop.eup %2664 }
0x152b   :  { %v1008_v29 = vmul.f32 %v2665_v25, %v2977_v48 }
0x158e   :  { %v1284_v23 = vpop.permute.xlu0 %1283 }
0x158f   :  { %v1286_v24 = vmul.f32 %v2657_v11, %v1284_v23 }
0x1591   :  { %1289 = vrot.lane.b32.xlu1 %v1286_v24, %s2732_s3 }
0x1592   :  { %v1011_v26 = vpop.permute.xlu0 %1010 }
0x1593   :  { %v1013_v27 = vmul.f32 %v2665_v25, %v1011_v26 }
0x1595   :  { %1015 = vrot.lane.b32.xlu0 %v1013_v27, %s2732_s3 }
0x1603   :  { %v1290_v28 = vpop.permute.xlu1 %1289 }
0x1604   :  { %2398 = vmatmul.mubr.msk.f32.vlgmr.msra.gmra.mrb[12].mxu1 %vm192_vm2, %v1290_v28 }
0x1605   :  { %2557 = vmatpush3.bf16.msra.mxu1 %v2987_v52  ;;  %2419 = vmatprep.mubr.msk.f32.mxu1 %vm2729_vm1, %v2730_v4 }
0x1606   :  { %2558 = vmatprep.subr.bf16.mxu1 %v2728_v0 }
0x1607   :  { %v1016_v30 = vpop.permute.xlu0 %1015 }
0x1608   :  { %v1018_v31 = vadd.f32 %v1016_v30, %v1008_v29 }
0x1609   :  { %2560 = vmatpush3.bf16.msra.mxu1 %v2997_v55 }
0x160a   :  { %2666 = vtanh.f32 %v1018_v31  ;;  %2567 = vmatprep.subr.bf16.mxu1 %v2728_v0 }
0x1614   :  { %v2667_v32 = vpop.eup %2666 }
0x1615   :  { %1021 = vrot.lane.b32.xlu0 %v2667_v32, %s2731_s25 }
0x1687   :  { %v1022_v33 = vpop.permute.xlu0 %1021 }
0x1688   :  { %v1024_v35 = vmul.f32 %v2665_v25, %v1022_v33 }
0x168a   :  { %1026 = vrot.lane.b32.xlu0 %v1024_v35, %s2732_s3 }
0x16d7   :  { %v1359_v41 = vpop.f32.mrb[12].mxu1 }
0x16d8   :  { %v1363_v62 = vadd.f32 %v1359_v41, %v1146_v37  ;;  %v2399_v42 = vpop.f32.mrb[13].mxu1  ;;  %v1161_v41 = vadd.f32 %v3023_v8, %v2974_v40 }
0x16da   :  { %2668 = vtanh.f32 %v1363_v62  ;;  %v2132_v46 = vmul.f32 -1.442695, %v1363_v62 }
0x16dc   :  { %2670 = vpow2.f32 %v2132_v46 }
0x16e4   :  { %v2669_v43 = vpop.eup %2668 }
0x16e5   :  { %1373 = vrot.lane.b32.xlu1 %v2669_v43, %s2731_s25 }
0x16e6   :  { %v2671_v47 = vpop.eup %2670 }
0x16e7   :  { %v1367_v34 = vadd.f32 1.0, %v2671_v47 }
0x16e9   :  { %2672 = vrcp.f32 %v1367_v34 }
0x16f3   :  { %v2673_v48 = vpop.eup %2672 }
0x16f4   :  { %v1371_v51 = vmul.f32 %v2673_v48, %v1280_v17 }
0x16fc   :  { %v1027_v44 = vpop.permute.xlu0 %1026 }
0x16fd   :  { %1030 = vst.msk [vmem:[#allocation2 + $0x38] sm:$0xff] %vm192_vm2, %v1027_v44 }
0x1704   :  { %v1038_v45 = vld [vmem:[#allocation2 + $0x38] sm:$0xff] }
0x1705   :  { %2376 = vmatmul.mubr.msk.f32.gmra.mrb[20].mxu0 %vm192_vm2, %v1038_v45 }
0x1706   :  { %2408 = vmatprep.mubr.msk.f32.mxu0 %vm2729_vm1, %v2730_v4 }
0x1757   :  { %v1374_v49 = vpop.permute.xlu1 %1373 }
0x1758   :  { %v1376_v50 = vmul.f32 %v2673_v48, %v1374_v49 }
0x175a   :  { %1378 = vrot.lane.b32.xlu1 %v1376_v50, %s2732_s3 }
0x17cc   :  { %v1379_v53 = vpop.permute.xlu1 %1378 }
0x17cd   :  { %v1381_v54 = vadd.f32 %v1379_v53, %v1371_v51 }
0x17cf   :  { %2674 = vtanh.f32 %v1381_v54 }
0x17d8   :  { %v3050_v56 = vpop.f32.mrb[20].mxu0 }
0x17d9   :  { %v2675_v57 = vpop.eup %2674  ;;  %v3052_v58 = vpop.f32.mrb[21].mxu0 }
0x17da   :  { %1384 = vrot.lane.b32.xlu1 %v2675_v57, %s2731_s25 }
0x184c   :  { %v1385_v60 = vpop.permute.xlu1 %1384 }
0x184d   :  { %v1387_v63 = vmul.f32 %v2673_v48, %v1385_v60 }
0x184f   :  { %1390 = vrot.lane.b32.xlu1 %v1387_v63, %s2732_s3  ;;  %v1166_v63 = vadd.f32 %v2972_v39, %v3023_v8 }
0x18c1   :  { %v1391_v1 = vpop.permute.xlu1 %1390 }
0x18c2   :  { %2409 = vmatmul.mubr.msk.f32.vlgmr.msra.gmra.mrb[22].mxu0 %vm192_vm2, %v1391_v1 }
0x18c3   :  { %2563 = vmatpush3.bf16.msra.mxu0 %v2987_v52  ;;  %2430 = vmatprep.mubr.msk.f32.mxu0 %vm2729_vm1, %v2730_v4 }
0x18c4   :  { %2564 = vmatprep.subr.bf16.mxu0 %v2728_v0 }
0x18c7   :  { %2566 = vmatpush3.bf16.msra.mxu0 %v2997_v55 }
0x18c8   :  { %2573 = vmatprep.subr.bf16.mxu0 %v2728_v0 }
0x1995   :  { %v1460_v3 = vpop.f32.mrb[22].mxu0 }
0x1996   :  { %v1464_v5 = vadd.f32 %v1460_v3, %v1151_v2  ;;  %v2410_v6 = vpop.f32.mrb[23].mxu0 }
0x1998   :  { %2676 = vtanh.f32 %v1464_v5  ;;  %v2134_v9 = vmul.f32 -1.442695, %v1464_v5 }
0x199a   :  { %2678 = vpow2.f32 %v2134_v9 }
0x19a2   :  { %v2677_v7 = vpop.eup %2676 }
0x19a3   :  { %1474 = vrot.lane.b32.xlu0 %v2677_v7, %s2731_s25 }
0x19a4   :  { %v2679_v12 = vpop.eup %2678 }
0x19a5   :  { %v1468_v10 = vadd.f32 1.0, %v2679_v12 }
0x19a7   :  { %2680 = vrcp.f32 %v1468_v10 }
0x19b1   :  { %v2681_v13 = vpop.eup %2680 }
0x19b2   :  { %v1472_v59 = vmul.f32 %v2681_v13, %v1381_v54 }
0x1a15   :  { %v1475_v61 = vpop.permute.xlu0 %1474 }
0x1a16   :  { %v1477_v11 = vmul.f32 %v2681_v13, %v1475_v61 }
0x1a18   :  { %1479 = vrot.lane.b32.xlu1 %v1477_v11, %s2732_s3 }
0x1a8a   :  { %v1480_v14 = vpop.permute.xlu1 %1479 }
0x1a8b   :  { %v1482_v38 = vadd.f32 %v1480_v14, %v1472_v59 }
0x1a8d   :  { %2682 = vtanh.f32 %v1482_v38 }
0x1a97   :  { %v2683_v15 = vpop.eup %2682 }
0x1a98   :  { %1485 = vrot.lane.b32.xlu0 %v2683_v15, %s2731_s25 }
0x1b0a   :  { %v1486_v16 = vpop.permute.xlu0 %1485 }
0x1b0b   :  { %v1488_v17 = vmul.f32 %v2681_v13, %v1486_v16 }
0x1b0d   :  { %1491 = vrot.lane.b32.xlu1 %v1488_v17, %s2732_s3 }
0x1b7f   :  { %v1492_v18 = vpop.permute.xlu1 %1491 }
0x1b80   :  { %2420 = vmatmul.mubr.msk.f32.vlgmr.msra.gmra.mrb[14].mxu1 %vm192_vm2, %v1492_v18 }
0x1b81   :  { %2569 = vmatpush3.bf16.msra.mxu1 %v2987_v52  ;;  %2441 = vmatprep.mubr.msk.f32.mxu1 %vm2729_vm1, %v2730_v4 }
0x1b82   :  { %2570 = vmatprep.subr.bf16.mxu1 %v2728_v0 }
0x1b85   :  { %2572 = vmatpush3.bf16.msra.mxu1 %v2997_v55 }
0x1b86   :  { %2579 = vmatprep.subr.bf16.mxu1 %v2728_v0 }
0x1c53   :  { %v1561_v20 = vpop.f32.mrb[14].mxu1 }
0x1c54   :  { %v1565_v21 = vadd.f32 %v1561_v20, %v1156_v19  ;;  %v2421_v22 = vpop.f32.mrb[15].mxu1 }
0x1c56   :  { %2684 = vtanh.f32 %v1565_v21  ;;  %v2136_v24 = vmul.f32 -1.442695, %v1565_v21 }
0x1c58   :  { %2686 = vpow2.f32 %v2136_v24 }
0x1c60   :  { %v2685_v23 = vpop.eup %2684 }
0x1c61   :  { %1575 = vrot.lane.b32.xlu0 %v2685_v23, %s2731_s25 }
0x1c62   :  { %v2687_v25 = vpop.eup %2686 }
0x1c63   :  { %v1569_v26 = vadd.f32 1.0, %v2687_v25 }
0x1c65   :  { %2688 = vrcp.f32 %v1569_v26 }
0x1c6f   :  { %v2689_v27 = vpop.eup %2688 }
0x1c70   :  { %v1573_v30 = vmul.f32 %v2689_v27, %v1482_v38  ;;  %v1171_v38 = vadd.f32 %v3023_v8, %v3052_v58 }
0x1cd3   :  { %v1576_v28 = vpop.permute.xlu0 %1575 }
0x1cd4   :  { %v1578_v29 = vmul.f32 %v2689_v27, %v1576_v28 }
0x1cd6   :  { %1580 = vrot.lane.b32.xlu1 %v1578_v29, %s2732_s3 }
0x1d48   :  { %v1581_v31 = vpop.permute.xlu1 %1580 }
0x1d49   :  { %v1583_v36 = vadd.f32 %v1581_v31, %v1573_v30  ;;  %v1176_v30 = vadd.f32 %v3050_v56, %v3023_v8  ;;  %v1994_v56 = vld [vmem:[%s3153_s7] sm:$0xff] }
0x1d4b   :  { %2690 = vtanh.f32 %v1583_v36 }
0x1d55   :  { %v2691_v32 = vpop.eup %2690 }
0x1d56   :  { %1586 = vrot.lane.b32.xlu0 %v2691_v32, %s2731_s25 }
0x1dc8   :  { %v1587_v33 = vpop.permute.xlu0 %1586 }
0x1dc9   :  { %v1589_v35 = vmul.f32 %v2689_v27, %v1587_v33 }
0x1dcb   :  { %1592 = vrot.lane.b32.xlu1 %v1589_v35, %s2732_s3 }
0x1e3d   :  { %v1593_v37 = vpop.permute.xlu1 %1592 }
0x1e3e   :  { %2431 = vmatmul.mubr.msk.f32.vlgmr.msra.gmra.mrb[24].mxu0 %vm192_vm2, %v1593_v37 }
0x1e3f   :  { %2575 = vmatpush3.bf16.msra.mxu0 %v2987_v52  ;;  %2452 = vmatprep.mubr.msk.f32.mxu0 %vm2729_vm1, %v2730_v4 }
0x1e40   :  { %2576 = vmatprep.subr.bf16.mxu0 %v2728_v0 }
0x1e43   :  { %2578 = vmatpush3.bf16.msra.mxu0 %v2997_v55 }
0x1e44   :  { %2585 = vmatprep.subr.bf16.mxu0 %v2728_v0 }
0x1f11   :  { %v1662_v62 = vpop.f32.mrb[24].mxu0 }
0x1f12   :  { %v1666_v42 = vadd.f32 %v1662_v62, %v1161_v41  ;;  %v2432_v43 = vpop.f32.mrb[25].mxu0 }
0x1f14   :  { %2692 = vtanh.f32 %v1666_v42  ;;  %v2138_v45 = vmul.f32 -1.442695, %v1666_v42 }
0x1f16   :  { %2694 = vpow2.f32 %v2138_v45 }
0x1f1e   :  { %v2693_v44 = vpop.eup %2692 }
0x1f1f   :  { %1676 = vrot.lane.b32.xlu0 %v2693_v44, %s2731_s25 }
0x1f20   :  { %v2695_v46 = vpop.eup %2694 }
0x1f21   :  { %v1670_v47 = vadd.f32 1.0, %v2695_v46  ;;  %v1995_v46 = vld [vmem:[%s3153_s7 + $0x8] sm:$0xff] }
0x1f23   :  { %2696 = vrcp.f32 %v1670_v47  ;;  %v1996_v47 = vld [vmem:[%s3153_s7 + $0x10] sm:$0xff] }
0x1f2d   :  { %v2697_v34 = vpop.eup %2696 }
0x1f2e   :  { %v1674_v50 = vmul.f32 %v2697_v34, %v1583_v36 }
0x1f91   :  { %v1677_v48 = vpop.permute.xlu0 %1676 }
0x1f92   :  { %v1679_v49 = vmul.f32 %v2697_v34, %v1677_v48  ;;  %v1997_v48 = vld [vmem:[%s3153_s7 + $0x18] sm:$0xff] }
0x1f94   :  { %1681 = vrot.lane.b32.xlu1 %v1679_v49, %s2732_s3  ;;  %v2589_v49 = vpack.c.bf16 %v1997_v48, %v1996_v47 }
0x2006   :  { %v1682_v51 = vpop.permute.xlu1 %1681 }
0x2007   :  { %v1684_v40 = vadd.f32 %v1682_v51, %v1674_v50 }
0x2009   :  { %2698 = vtanh.f32 %v1684_v40 }
0x2013   :  { %v2699_v53 = vpop.eup %2698 }
0x2014   :  { %1687 = vrot.lane.b32.xlu0 %v2699_v53, %s2731_s25 }
0x2086   :  { %v1688_v54 = vpop.permute.xlu0 %1687 }
0x2087   :  { %v1690_v57 = vmul.f32 %v2697_v34, %v1688_v54  ;;  %v2586_v34 = vpack.c.bf16 %v1995_v46, %v1994_v56  ;;  %v2145_v54 = vld [vmem:[%s3154_s8] ss:$0 sm:$0xff] }
0x2089   :  { %1693 = vrot.lane.b32.xlu1 %v1690_v57, %s2732_s3 }
0x20fb   :  { %v1694_v60 = vpop.permute.xlu1 %1693 }
0x20fc   :  { %2442 = vmatmul.mubr.msk.f32.vlgmr.msra.gmra.mrb[16].mxu1 %vm192_vm2, %v1694_v60 }
0x20fd   :  { %2581 = vmatpush3.bf16.msra.mxu1 %v2987_v52  ;;  %2463 = vmatprep.mubr.msk.f32.mxu1 %vm2729_vm1, %v2730_v4 }
0x20fe   :  { %2582 = vmatprep.subr.bf16.mxu1 %v2728_v0 }
0x2101   :  { %2584 = vmatpush3.bf16.msra.mxu1 %v2997_v55 }
0x21cf   :  { %v1763_v1 = vpop.f32.mrb[16].mxu1 }
0x21d0   :  { %v1767_v2 = vadd.f32 %v1763_v1, %v1166_v63  ;;  %v2443_v3 = vpop.f32.mrb[17].mxu1 }
0x21d2   :  { %2700 = vtanh.f32 %v1767_v2  ;;  %v2140_v6 = vmul.f32 -1.442695, %v1767_v2 }
0x21d4   :  { %2702 = vpow2.f32 %v2140_v6 }
0x21dc   :  { %v2701_v5 = vpop.eup %2700 }
0x21dd   :  { %1777 = vrot.lane.b32.xlu0 %v2701_v5, %s2731_s25 }
0x21de   :  { %v2703_v52 = vpop.eup %2702 }
0x21df   :  { %v1771_v7 = vadd.f32 1.0, %v2703_v52 }
0x21e1   :  { %2704 = vrcp.f32 %v1771_v7 }
0x21eb   :  { %v2705_v9 = vpop.eup %2704 }
0x21ec   :  { %v1775_v55 = vmul.f32 %v2705_v9, %v1684_v40 }
0x224f   :  { %v1778_v12 = vpop.permute.xlu0 %1777 }
0x2250   :  { %v1780_v10 = vmul.f32 %v2705_v9, %v1778_v12 }
0x2252   :  { %1782 = vrot.lane.b32.xlu1 %v1780_v10, %s2732_s3 }
0x22c4   :  { %v1783_v13 = vpop.permute.xlu1 %1782 }
0x22c5   :  { %v1785_v39 = vadd.f32 %v1783_v13, %v1775_v55 }
0x22c7   :  { %2706 = vtanh.f32 %v1785_v39 }
0x22d1   :  { %v2707_v61 = vpop.eup %2706 }
0x22d2   :  { %1788 = vrot.lane.b32.xlu0 %v2707_v61, %s2731_s25 }
0x2344   :  { %v1789_v11 = vpop.permute.xlu0 %1788 }
0x2345   :  { %v1791_v59 = vmul.f32 %v2705_v9, %v1789_v11 }
0x2347   :  { %1794 = vrot.lane.b32.xlu1 %v1791_v59, %s2732_s3 }
0x23b9   :  { %v1795_v14 = vpop.permute.xlu1 %1794 }
0x23ba   :  { %2453 = vmatmul.mubr.msk.f32.vlgmr.msra.gmra.mrb[26].mxu0 %vm192_vm2, %v1795_v14 }
0x23bb   :  { %2474 = vmatprep.mubr.msk.f32.mxu0 %vm2729_vm1, %v2730_v4  ;;  %2587 = vmatpush3.bf16.msra.mxu0 %v2586_v34 }
0x23bc   :  { %2588 = vmatprep.subr.bf16.mxu0 %v2728_v0 }
0x23bf   :  { %2590 = vmatpush3.bf16.msra.mxu0 %v2589_v49 }
0x248d   :  { %v1864_v15 = vpop.f32.mrb[26].mxu0 }
0x248e   :  { %v1868_v16 = vadd.f32 %v1864_v15, %v1171_v38  ;;  %v2454_v17 = vpop.f32.mrb[27].mxu0 }
0x2490   :  { %2708 = vtanh.f32 %v1868_v16  ;;  %v2142_v19 = vmul.f32 -1.442695, %v1868_v16 }
0x2492   :  { %2710 = vpow2.f32 %v2142_v19 }
0x249a   :  { %v2709_v18 = vpop.eup %2708 }
0x249b   :  { %1878 = vrot.lane.b32.xlu0 %v2709_v18, %s2731_s25 }
0x249c   :  { %v2711_v20 = vpop.eup %2710 }
0x249d   :  { %v1872_v21 = vadd.f32 1.0, %v2711_v20 }
0x249f   :  { %2712 = vrcp.f32 %v1872_v21 }
0x24a9   :  { %v2713_v22 = vpop.eup %2712 }
0x24aa   :  { %v1876_v4 = vmul.f32 %v2713_v22, %v1785_v39 }
0x250d   :  { %v1879_v23 = vpop.permute.xlu0 %1878 }
0x250e   :  { %v1881_v24 = vmul.f32 %v2713_v22, %v1879_v23 }
0x2510   :  { %1883 = vrot.lane.b32.xlu1 %v1881_v24, %s2732_s3 }
0x2582   :  { %v1884_v25 = vpop.permute.xlu1 %1883 }
0x2583   :  { %v1886_v58 = vadd.f32 %v1884_v25, %v1876_v4 }
0x2585   :  { %2714 = vtanh.f32 %v1886_v58 }
0x258f   :  { %v2715_v26 = vpop.eup %2714 }
0x2590   :  { %1889 = vrot.lane.b32.xlu0 %v2715_v26, %s2731_s25 }
0x2602   :  { %v1890_v27 = vpop.permute.xlu0 %1889 }
0x2603   :  { %v1892_v28 = vmul.f32 %v2713_v22, %v1890_v27 }
0x2605   :  { %1895 = vrot.lane.b32.xlu1 %v1892_v28, %s2732_s3 }
0x2677   :  { %v1896_v29 = vpop.permute.xlu1 %1895 }
0x2678   :  { %2464 = vmatmul.mubr.msk.f32.vlgmr.msra.gmra.mrb[18].mxu1 %vm192_vm2, %v1896_v29 }
0x274b   :  { %v1965_v31 = vpop.f32.mrb[18].mxu1 }
0x274c   :  { %v1969_v36 = vadd.f32 %v1965_v31, %v1176_v30  ;;  %v2465_v32 = vpop.f32.mrb[19].mxu1 }
0x274e   :  { %2716 = vtanh.f32 %v1969_v36  ;;  %v2144_v35 = vmul.f32 -1.442695, %v1969_v36 }
0x2750   :  { %2718 = vpow2.f32 %v2144_v35 }
0x2758   :  { %v2717_v33 = vpop.eup %2716 }
0x2759   :  { %1979 = vrot.lane.b32.xlu0 %v2717_v33, %s2731_s25 }
0x275a   :  { %v2719_v37 = vpop.eup %2718 }
0x275b   :  { %v1973_v41 = vadd.f32 1.0, %v2719_v37 }
0x275d   :  { %2720 = vrcp.f32 %v1973_v41 }
0x2767   :  { %v2721_v62 = vpop.eup %2720 }
0x2768   :  { %v1977_v44 = vmul.f32 %v2721_v62, %v1886_v58 }
0x27cb   :  { %v1980_v42 = vpop.permute.xlu0 %1979 }
0x27cc   :  { %v1982_v43 = vmul.f32 %v2721_v62, %v1980_v42 }
0x27ce   :  { %1984 = vrot.lane.b32.xlu1 %v1982_v43, %s2732_s3 }
0x2840   :  { %v1985_v45 = vpop.permute.xlu1 %1984 }
0x2841   :  { %v1987_v8 = vadd.f32 %v1985_v45, %v1977_v44 }
0x2843   :  { %2722 = vtanh.f32 %v1987_v8 }
0x284d   :  { %v2723_v50 = vpop.eup %2722 }
0x284e   :  { %1990 = vrot.lane.b32.xlu0 %v2723_v50, %s2731_s25 }
0x28c0   :  { %v1991_v51 = vpop.permute.xlu0 %1990 }
0x28c1   :  { %v1993_v40 = vmul.f32 %v2721_v62, %v1991_v51 }
0x28c3   :  { %2006 = vrot.lane.b32.xlu1 %v1993_v40, %s2732_s3 }
0x2935   :  { %v2007_v53 = vpop.permute.xlu1 %2006 }
0x2936   :  { %2475 = vmatmul.mubr.msk.f32.vlgmr.msra.gmra.mrb[28].mxu0 %vm192_vm2, %v2007_v53 }
0x2a09   :  { %v2076_v57 = vpop.f32.mrb[28].mxu0 }
0x2a0a   :  { %v2077_v60 = vadd.f32 %v2145_v54, %v2076_v57  ;;  %v2476_v63 = vpop.f32.mrb[29].mxu0 }
0x2a0c   :  { %v2081_v0 = vsel %vm2080_vm3, %v2077_v60, -inf }
0x2a0d   :  { %2082 = vmax.xlane.f32.xlu0 %v2081_v0 }
0x2a9a   :  { %v2083_v1 = vpop.xlane.xlu0 %2082 }
0x2a9b   :  { %v2084_v2 = vsub.f32 %v2077_v60, %v2083_v1 }
0x2a9d   :  { %v2085_v3 = vmul.f32 1.442695, %v2084_v2 }
0x2a9f   :  { %2724 = vpow2.f32 %v2085_v3 }
0x2aa9   :  { %v2725_v5 = vpop.eup %2724 }
0x2aaa   :  { %v2087_v6 = vsel %vm2080_vm3, %v2725_v5, 0.0 }
0x2aab   :  { %2088 = vadd.xlane.f32.xlu1 %v2087_v6 }
0x2b38   :  { %v2089_v52 = vpop.xlane.xlu1 %2088 }
0x2b39   :  { %2726 = vrcp.f32 %v2089_v52 }
0x2b43   :  { %v2727_v7 = vpop.eup %2726 }
0x2b44   :  { %v2091_v9 = vmul.f32 %v2727_v7, %v2725_v5 }
0x2b46   :  { %2092 = vst.msk [vmem:[%s3155_s9] sm:$0xff] %vm2080_vm3, %v2091_v9 }

</bundles_post_ra>
